<compile_context>
chip_gen: v7x
topology: tpu7x:2x2x1
jax: 0.10.0
libtpu: 0.0.40
codegen_flags: <defaults>
</compile_context>

<pallas_src>
import math

import jax
import jax.numpy as jnp
from jax.experimental import pallas as pl
from jax.experimental.pallas import tpu as pltpu


# --------------------------------- GELU (tanh form) --------------------------------------
_GELU_A = 0.7978845608028654          # sqrt(2/pi)
_GELU_B = _GELU_A * 0.044715          # folded constant (saves one VALU mul)


def _gelu(x):
    # tanh-approximate GELU; one EUP tanh, constants folded into x*(A + B*x^2).
    x2 = x * x
    return 0.5 * x * (1.0 + jnp.tanh(x * (_GELU_A + _GELU_B * x2)))


# ------------------------------------ Pallas kernel --------------------------------------
def _lvf_kernel(coord_ref, feat_ref,
                w1_ref, b1_ref, w2_ref, b2_ref,
                w3_ref, b3_ref, w4_ref, b4_ref,
                w5_ref, b5_ref, w6_ref, b6_ref,
                out_ref, h_ref):
    # grid = (num_pixel_tiles, B); batch is the innermost ("arbitrary") axis so the
    # batch-invariant spatial_coord_embedding is computed once per pixel tile and
    # cached (in bf16) in the VMEM scratch h_ref.
    @pl.when(pl.program_id(1) == 0)
    def _():
        x = coord_ref[0]                                                    # [Din, tile_n] f32
        h = jnp.dot(w1_ref[...], x, preferred_element_type=jnp.float32) + b1_ref[...]
        h = _gelu(h)
        h = jnp.dot(w2_ref[...], h, preferred_element_type=jnp.float32) + b2_ref[...]
        h_ref[...] = h.astype(h_ref.dtype)                                  # [E, tile_n] bf16

    # embedding_feature = query_inr_feature * query_inr_coord_embedding
    # (gate computed in f32, then cast down to bf16 to feed the bf16 MXU decoder).
    f = feat_ref[0].astype(jnp.float32)                                     # [E, tile_n]
    emb = (f * h_ref[...].astype(jnp.float32)).astype(jnp.bfloat16)

    # rgb_decoder: (Conv1x1 -> GELU) x3 -> Conv1x1; bf16 x bf16 MXU, f32 accumulation.
    z = _gelu(jnp.dot(w3_ref[...], emb, preferred_element_type=jnp.float32)
              + b3_ref[...]).astype(jnp.bfloat16)
    z = _gelu(jnp.dot(w4_ref[...], z, preferred_element_type=jnp.float32)
              + b4_ref[...]).astype(jnp.bfloat16)
    z = _gelu(jnp.dot(w5_ref[...], z, preferred_element_type=jnp.float32)
              + b5_ref[...]).astype(jnp.bfloat16)
    rgb = jnp.dot(w6_ref[...], z, preferred_element_type=jnp.float32) + b6_ref[...]
    out_ref[0] = rgb.astype(out_ref.dtype)                                  # [3, tile_n] lane-dense


def _lvf_pallas(coord_cf, feat_cf, weights, *, out_c, tile_n, vmem_limit_bytes):
    """coord_cf: [1, Din, n_pad] f32; feat_cf: [B, E, n_pad] bf16 -> [B, out_c, n_pad] f32."""
    _, Din, n_pad = coord_cf.shape
    B, E, _ = feat_cf.shape
    assert n_pad % tile_n == 0 and tile_n % 128 == 0
    num_tiles = n_pad // tile_n

    in_specs = [
        # coord stream is batch-invariant: block index ignores b -> DMA'd once per tile.
        pl.BlockSpec((1, Din, tile_n), lambda n, b: (0, 0, n)),
        # feat is the dominant HBM stream (bf16 to halve its DMA bytes).
        pl.BlockSpec((1, E, tile_n), lambda n, b: (b, 0, n)),
    ]
    # weights / biases are small: fully VMEM-resident (constant block index -> no re-DMA).
    in_specs += [pl.BlockSpec(w.shape, lambda n, b: (0, 0)) for w in weights]

    return pl.pallas_call(
        _lvf_kernel,
        out_shape=jax.ShapeDtypeStruct((B, out_c, n_pad), jnp.float32),
        grid=(num_tiles, B),
        in_specs=in_specs,
        out_specs=pl.BlockSpec((1, out_c, tile_n), lambda n, b: (b, 0, n)),
        scratch_shapes=[pltpu.VMEM((E, tile_n), jnp.bfloat16)],
        compiler_params=pltpu.CompilerParams(
            # pixel-tile axis is parallel (megacore-shardable); batch axis must be
            # "arbitrary" because the cached h scratch is carried across it.
            dimension_semantics=("parallel", "arbitrary"),
            vmem_limit_bytes=int(vmem_limit_bytes),
        ),
    )(coord_cf, feat_cf, *weights)


# --------------------------------------- glue --------------------------------------------
def _make_coord(shape):
    # LIIF-style make_coord, flatten=False: coords in (-1, 1), [h, w, 2].
    seqs = []
    for n in shape:
        r = 1.0 / n
        seqs.append(-1.0 + r + 2.0 * r * jnp.arange(n, dtype=jnp.float32))
    yy, xx = jnp.meshgrid(seqs[0], seqs[1], indexing="ij")
    return jnp.stack([yy, xx], axis=-1)


def _prepare_inputs(inr_feature, sH, sW, qks, n_pad, feat_dtype=jnp.bfloat16):
    """Channel-first, tile-aligned inputs (pixel axis padded to n_pad *before* the
    gather so no separate full-array pad copy of feat is materialized):
         coord_cf [1, 2*Q+2, n_pad] f32   (batch-invariant, NOT broadcast over B)
         feat_cf  [B, C*Q,   n_pad] feat_dtype (channel order q*C + c)
    """
    B, C, H, W = inr_feature.shape
    Q = qks * qks
    rx, ry = 1.0 / H, 1.0 / W
    N = sH * sW

    # _sr_coord_to_query_coord (uniform kernel type), replicating the reference exactly
    # (including the c1 = c0 + dxs quirk).
    sr_coord = _make_coord((sH, sW))                                  # [sH, sW, 2]
    dxy = jnp.arange(qks, dtype=jnp.float32) - (qks // 2)
    dxs, _dys = jnp.meshgrid(dxy, dxy, indexing="ij")
    dxs = dxs.reshape(Q)
    c0 = sr_coord[..., 0:1] + dxs                                     # [sH, sW, Q]
    c1 = c0 + dxs                                                     # (reference quirk)
    query_coord = jnp.stack([c0, c1], axis=-1).reshape(N, Q, 2)       # [N, Q, 2]
    if n_pad != N:
        # pad the tiny coord/index tables up front; the gathers below then produce
        # tile-aligned arrays directly (pad columns are discarded in the wrapper).
        query_coord = jnp.pad(query_coord, ((0, n_pad - N), (0, 0), (0, 0)))

    # F.grid_sample(..., mode='nearest', align_corners=False, padding_mode='zeros')
    # with grid = query_coord.flip(-1): x := c1 indexes W, y := c0 indexes H.
    gx, gy = query_coord[..., 1], query_coord[..., 0]
    ix = jnp.round(((gx + 1.0) * W - 1.0) / 2.0).astype(jnp.int32)    # round-half-even, like torch
    iy = jnp.round(((gy + 1.0) * H - 1.0) / 2.0).astype(jnp.int32)
    valid = (ix >= 0) & (ix < W) & (iy >= 0) & (iy < H)
    ixc = jnp.clip(ix, 0, W - 1)
    iyc = jnp.clip(iy, 0, H - 1)

    # query_inr_coord (nearest-sampled feature-grid coordinates), then relative coords.
    inr_coord = _make_coord((H, W))                                   # [H, W, 2]
    samp_coord = jnp.where(valid[..., None], inr_coord[iyc, ixc], 0.0)    # [n_pad, Q, 2]
    rel = (samp_coord - query_coord).reshape(n_pad, Q * 2)            # channel order q*2 + c
    rng = jnp.broadcast_to(jnp.array([rx, ry], jnp.float32), (n_pad, 2))
    coord_cf = jnp.concatenate([rel, rng], axis=-1).T[None]           # [1, 2Q+2, n_pad]

    # query_inr_feature, channel order (q, c) -> q*C + c, channel-first.
    feat = inr_feature[:, :, iyc, ixc]                                # [B, C, n_pad, Q]
    feat = jnp.where(valid[None, None], feat, 0.0)
    feat_cf = jnp.transpose(feat, (0, 3, 1, 2)).reshape(B, Q * C, n_pad)

    return coord_cf.astype(jnp.float32), feat_cf.astype(feat_dtype)


def _prepare_weights(params):
    """Kernel-side weight dtypes: decoder weights bf16 (native MXU rate), coord MLP
    and all biases f32 (biases are added to the f32 accumulator)."""
    bf = jnp.bfloat16
    f32 = jnp.float32
    return [
        params["w1"].astype(f32), params["b1"].astype(f32),
        params["w2"].astype(f32), params["b2"].astype(f32),
        params["w3"].astype(bf), params["b3"].astype(f32),
        params["w4"].astype(bf), params["b4"].astype(f32),
        params["w5"].astype(bf), params["b5"].astype(f32),
        params["w6"].astype(bf), params["b6"].astype(f32),
    ]


def _choose_tile_n(N, E, Din, out_c, weight_bytes, *,
                   target_tile=2048, vmem_budget=40 * 1024 * 1024):
    """Pick the largest 128-multiple pixel tile that (a) keeps the estimated VMEM
    footprint under `vmem_budget` (safe on v7x's 64 MiB physical VMEM), (b) does not
    exceed the padded pixel count, and (c) keeps >=2 tiles on the parallel axis when
    there is enough work (so both v7x TensorCores participate).  Also derives the
    vmem_limit_bytes from the footprint instead of a blind constant."""
    n128 = pl.cdiv(N, 128) * 128
    # bytes per pixel column:
    #   feat bf16 x2 buffers + coord f32 x2 + out f32 x2 + h scratch bf16
    #   + emb (f32 + bf16 temp) + ~4 decoder activation tiles (f32 + bf16 temps).
    per_col = (2 * E * 2 + 2 * Din * 4 + 2 * out_c * 4
               + E * 2 + E * 6 + 4 * 128 * 6)
    avail = max(vmem_budget - 2 * weight_bytes, 2 * 1024 * 1024)
    max_tile = max(128, (avail // per_col) // 128 * 128)

    tile = max(128, (min(target_tile, n128, max_tile) // 128) * 128)
    while pl.cdiv(n128, tile) < 2 and tile > 128:
        tile = max(128, ((tile // 2) // 128) * 128)

    footprint = 2 * weight_bytes + per_col * tile
    vmem_limit = min(max(footprint + 8 * 1024 * 1024, 32 * 1024 * 1024),
                     48 * 1024 * 1024)
    return tile, vmem_limit


def large_view_field_spatial_embedding(inr_feature, sH, sW, params, *,
                                       query_kernel_size=3,
                                       feat_dtype=jnp.bfloat16,
                                       target_tile=2048):
    B, C, H, W = inr_feature.shape
    qks = query_kernel_size
    Q = qks * qks
    E = C * Q
    Din = 2 * Q + 2
    out_c = params["w6"].shape[0]
    N = sH * sW

    weights = _prepare_weights(params)
    weight_bytes = sum(int(w.size) * w.dtype.itemsize for w in weights)

    tile_n, vmem_limit = _choose_tile_n(N, E, Din, out_c, weight_bytes,
                                        target_tile=target_tile)
    n_pad = pl.cdiv(N, tile_n) * tile_n

    coord_cf, feat_cf = _prepare_inputs(inr_feature, sH, sW, qks, n_pad, feat_dtype)
    rgb = _lvf_pallas(coord_cf, feat_cf, weights, out_c=out_c,
                      tile_n=tile_n, vmem_limit_bytes=vmem_limit)     # [B, out_c, n_pad]
    return rgb[:, :, :N].reshape(B, out_c, sH, sW)                    # NCHW, like PyTorch


# pure-JAX reference of the same math / same dtype choices (for the self-check only).
def _reference_mlp(coord_cf, feat_cf, params):
    hi = jax.lax.Precision.HIGHEST
    bf = jnp.bfloat16
    x = coord_cf[0]                                                   # [Din, N] f32
    h = _gelu(jnp.einsum("oi,in->on", params["w1"], x, precision=hi) + params["b1"])
    h = jnp.einsum("oi,in->on", params["w2"], h, precision=hi) + params["b2"]
    h = h.astype(bf)
    emb = (feat_cf.astype(jnp.float32) * h[None].astype(jnp.float32)).astype(bf)

    def dec(w, b, z, act=True):
        y = jnp.einsum("oi,bin->bon", w.astype(bf), z,
                       preferred_element_type=jnp.float32) + b
        return _gelu(y).astype(bf) if act else y

    z = dec(params["w3"], params["b3"], emb)
    z = dec(params["w4"], params["b4"], z)
    z = dec(params["w5"], params["b5"], z)
    return dec(params["w6"], params["b6"], z, act=False)             # [B, 3, N] f32


def init_params(key, global_inr_channel, qks, coords_dim=2):
    Q = qks * qks
    Din = coords_dim * Q + 2
    E = global_inr_channel * Q
    # Conv2d 1x1 weights stored exactly like PyTorch ([Cout, Cin]); biases as [Cout, 1].
    dims = [(E, Din), (E, E), (128, E), (128, 128), (128, 128), (3, 128)]
    params = {}
    keys = jax.random.split(key, 2 * len(dims))
    for i, (co, ci) in enumerate(dims):
        params[f"w{i + 1}"] = (jax.random.normal(keys[2 * i], (co, ci), jnp.float32)
                               * (1.0 / math.sqrt(ci)))
        params[f"b{i + 1}"] = jax.random.normal(keys[2 * i + 1], (co, 1), jnp.float32) * 0.01
    return params


if __name__ == "__main__":
    key = jax.random.PRNGKey(0)
    k_feat, k_param = jax.random.split(key)

    B, C, H, W = 2, 4, 8, 8          # inr_feature: [B, C, H, W]
    sH, sW = 16, 16                  # output resolution
    qks = 3                          # query_kernel_size (query_kernel_type='uniform')

    inr_feature = jax.random.normal(k_feat, (B, C, H, W), jnp.float32)
    params = init_params(k_param, global_inr_channel=C, qks=qks)

    rgb = large_view_field_spatial_embedding(inr_feature, sH, sW, params,
                                             query_kernel_size=qks)
    rgb = jax.block_until_ready(rgb)
    assert rgb.shape == (B, 3, sH, sW), rgb.shape

    # self-check against a pure-JAX reference of the same math / same precision choices
    coord_cf, feat_cf = _prepare_inputs(inr_feature, sH, sW, qks, sH * sW, jnp.bfloat16)
    ref = _reference_mlp(coord_cf, feat_cf, params).reshape(B, 3, sH, sW)
    err = float(jnp.max(jnp.abs(rgb - ref)))
    assert jnp.allclose(rgb, ref, atol=3e-2, rtol=3e-2), f"max|err|={err}"

    print("KERNEL_OK")
</pallas_src>

<mosaic_0001>
module attributes {stable_mosaic.version = 11 : i64} {
  func.func @_lvf_kernel(%arg0: i32, %arg1: i32, %arg2: memref<1x20x128xf32, #tpu.memory_space<vmem>>, %arg3: memref<1x36x128xbf16, #tpu.memory_space<vmem>>, %arg4: memref<36x20xf32, #tpu.memory_space<vmem>>, %arg5: memref<36x1xf32, #tpu.memory_space<vmem>>, %arg6: memref<36x36xf32, #tpu.memory_space<vmem>>, %arg7: memref<36x1xf32, #tpu.memory_space<vmem>>, %arg8: memref<128x36xbf16, #tpu.memory_space<vmem>>, %arg9: memref<128x1xf32, #tpu.memory_space<vmem>>, %arg10: memref<128x128xbf16, #tpu.memory_space<vmem>>, %arg11: memref<128x1xf32, #tpu.memory_space<vmem>>, %arg12: memref<128x128xbf16, #tpu.memory_space<vmem>>, %arg13: memref<128x1xf32, #tpu.memory_space<vmem>>, %arg14: memref<3x128xbf16, #tpu.memory_space<vmem>>, %arg15: memref<3x1xf32, #tpu.memory_space<vmem>>, %arg16: memref<1x3x128xf32, #tpu.memory_space<vmem>>, %arg17: memref<36x128xbf16, #tpu.memory_space<vmem>>) attributes {dimension_semantics = [#tpu.dimension_semantics<parallel>, #tpu.dimension_semantics<arbitrary>], iteration_bounds = array<i64: 2, 2>, scalar_prefetch = 0 : i64, scratch_operands = 1 : i64, tpu.core_type = #tpu.core_type<tc>, window_params = [{transform_indices = @transform_0, window_bounds = array<i64: 1, 20, 128>}, {transform_indices = @transform_1, window_bounds = array<i64: 1, 36, 128>}, {pipeline_mode = #tpu.pipeline_mode<synchronous>, transform_indices = @transform_2, window_bounds = array<i64: 36, 20>}, {pipeline_mode = #tpu.pipeline_mode<synchronous>, transform_indices = @transform_3, window_bounds = array<i64: 36, 1>}, {pipeline_mode = #tpu.pipeline_mode<synchronous>, transform_indices = @transform_4, window_bounds = array<i64: 36, 36>}, {pipeline_mode = #tpu.pipeline_mode<synchronous>, transform_indices = @transform_5, window_bounds = array<i64: 36, 1>}, {pipeline_mode = #tpu.pipeline_mode<synchronous>, transform_indices = @transform_6, window_bounds = array<i64: 128, 36>}, {pipeline_mode = #tpu.pipeline_mode<synchronous>, transform_indices = @transform_7, window_bounds = array<i64: 128, 1>}, {pipeline_mode = #tpu.pipeline_mode<synchronous>, transform_indices = @transform_8, window_bounds = array<i64: 128, 128>}, {pipeline_mode = #tpu.pipeline_mode<synchronous>, transform_indices = @transform_9, window_bounds = array<i64: 128, 1>}, {pipeline_mode = #tpu.pipeline_mode<synchronous>, transform_indices = @transform_10, window_bounds = array<i64: 128, 128>}, {pipeline_mode = #tpu.pipeline_mode<synchronous>, transform_indices = @transform_11, window_bounds = array<i64: 128, 1>}, {pipeline_mode = #tpu.pipeline_mode<synchronous>, transform_indices = @transform_12, window_bounds = array<i64: 3, 128>}, {pipeline_mode = #tpu.pipeline_mode<synchronous>, transform_indices = @transform_13, window_bounds = array<i64: 3, 1>}, {transform_indices = @transform_14, window_bounds = array<i64: 1, 3, 128>}]} {
    %c0_i32 = arith.constant 0 : i32
    %0 = arith.cmpi eq, %arg1, %c0_i32 : i32
    %1 = arith.extui %0 : i1 to i32
    %c0_i32_0 = arith.constant 0 : i32
    %2 = arith.cmpi ne, %1, %c0_i32_0 : i32
    scf.if %2 {
      %c0_39 = arith.constant 0 : index
      %c0_40 = arith.constant 0 : index
      %c0_41 = arith.constant 0 : index
      %72 = vector.load %arg2[%c0_39, %c0_40, %c0_41] : memref<1x20x128xf32, #tpu.memory_space<vmem>>, vector<1x20x128xf32>
      %73 = vector.shape_cast %72 : vector<1x20x128xf32> to vector<20x128xf32>
      %c0_42 = arith.constant 0 : index
      %c0_43 = arith.constant 0 : index
      %74 = vector.load %arg4[%c0_42, %c0_43] : memref<36x20xf32, #tpu.memory_space<vmem>>, vector<36x20xf32>
      %cst_44 = arith.constant dense<0.000000e+00> : vector<36x128xf32>
      %75 = tpu.matmul %74, %73, %cst_44 {dimension_numbers = #tpu.dot_dimension_numbers<[1], [0], [0], [1], [0, 0, 1, 1], [], []>} : vector<36x20xf32>, vector<20x128xf32>, vector<36x128xf32> -> vector<36x128xf32>
      %c0_45 = arith.constant 0 : index
      %c0_46 = arith.constant 0 : index
      %76 = vector.load %arg5[%c0_45, %c0_46] : memref<36x1xf32, #tpu.memory_space<vmem>>, vector<36x1xf32>
      %77 = vector.broadcast %76 : vector<36x1xf32> to vector<36x128xf32>
      %78 = arith.addf %75, %77 : vector<36x128xf32>
      %79 = arith.mulf %78, %78 : vector<36x128xf32>
      %cst_47 = arith.constant 5.000000e-01 : f32
      %80 = vector.broadcast %cst_47 : f32 to vector<36x128xf32>
      %81 = arith.mulf %80, %78 : vector<36x128xf32>
      %cst_48 = arith.constant 0.0356774069 : f32
      %82 = vector.broadcast %cst_48 : f32 to vector<36x128xf32>
      %83 = arith.mulf %82, %79 : vector<36x128xf32>
      %cst_49 = arith.constant 0.797884583 : f32
      %84 = vector.broadcast %cst_49 : f32 to vector<36x128xf32>
      %85 = arith.addf %84, %83 : vector<36x128xf32>
      %86 = arith.mulf %78, %85 : vector<36x128xf32>
      %87 = math.tanh %86 : vector<36x128xf32>
      %cst_50 = arith.constant 1.000000e+00 : f32
      %88 = vector.broadcast %cst_50 : f32 to vector<36x128xf32>
      %89 = arith.addf %88, %87 : vector<36x128xf32>
      %90 = arith.mulf %81, %89 : vector<36x128xf32>
      %c0_51 = arith.constant 0 : index
      %c0_52 = arith.constant 0 : index
      %91 = vector.load %arg6[%c0_51, %c0_52] : memref<36x36xf32, #tpu.memory_space<vmem>>, vector<36x36xf32>
      %cst_53 = arith.constant dense<0.000000e+00> : vector<36x128xf32>
      %92 = tpu.matmul %91, %90, %cst_53 {dimension_numbers = #tpu.dot_dimension_numbers<[1], [0], [0], [1], [0, 0, 1, 1], [], []>} : vector<36x36xf32>, vector<36x128xf32>, vector<36x128xf32> -> vector<36x128xf32>
      %c0_54 = arith.constant 0 : index
      %c0_55 = arith.constant 0 : index
      %93 = vector.load %arg7[%c0_54, %c0_55] : memref<36x1xf32, #tpu.memory_space<vmem>>, vector<36x1xf32>
      %94 = vector.broadcast %93 : vector<36x1xf32> to vector<36x128xf32>
      %95 = arith.addf %92, %94 : vector<36x128xf32>
      %96 = arith.truncf %95 : vector<36x128xf32> to vector<36x128xbf16>
      %c0_56 = arith.constant 0 : index
      %c0_57 = arith.constant 0 : index
      %97 = vector.load %arg17[%c0_56, %c0_57] : memref<36x128xbf16, #tpu.memory_space<vmem>>, vector<36x128xbf16>
      tpu.vector_store %arg17[%c0_56, %c0_57], %96 {strides = array<i32>} : memref<36x128xbf16, #tpu.memory_space<vmem>>, vector<36x128xbf16>,
    } else {
    }
    %c0 = arith.constant 0 : index
    %c0_1 = arith.constant 0 : index
    %c0_2 = arith.constant 0 : index
    %3 = vector.load %arg3[%c0, %c0_1, %c0_2] : memref<1x36x128xbf16, #tpu.memory_space<vmem>>, vector<1x36x128xbf16>
    %4 = vector.shape_cast %3 : vector<1x36x128xbf16> to vector<36x128xbf16>
    %5 = arith.extf %4 : vector<36x128xbf16> to vector<36x128xf32>
    %c0_3 = arith.constant 0 : index
    %c0_4 = arith.constant 0 : index
    %6 = vector.load %arg17[%c0_3, %c0_4] : memref<36x128xbf16, #tpu.memory_space<vmem>>, vector<36x128xbf16>
    %7 = arith.extf %6 : vector<36x128xbf16> to vector<36x128xf32>
    %8 = arith.mulf %5, %7 : vector<36x128xf32>
    %9 = arith.truncf %8 : vector<36x128xf32> to vector<36x128xbf16>
    %c0_5 = arith.constant 0 : index
    %c0_6 = arith.constant 0 : index
    %10 = vector.load %arg8[%c0_5, %c0_6] : memref<128x36xbf16, #tpu.memory_space<vmem>>, vector<128x36xbf16>
    %cst = arith.constant dense<0.000000e+00> : vector<128x128xf32>
    %11 = tpu.matmul %10, %9, %cst {dimension_numbers = #tpu.dot_dimension_numbers<[1], [0], [0], [1], [0, 0, 1, 1], [], []>} : vector<128x36xbf16>, vector<36x128xbf16>, vector<128x128xf32> -> vector<128x128xf32>
    %c0_7 = arith.constant 0 : index
    %c0_8 = arith.constant 0 : index
    %12 = vector.load %arg9[%c0_7, %c0_8] : memref<128x1xf32, #tpu.memory_space<vmem>>, vector<128x1xf32>
    %13 = vector.broadcast %12 : vector<128x1xf32> to vector<128x128xf32>
    %14 = arith.addf %11, %13 : vector<128x128xf32>
    %15 = arith.mulf %14, %14 : vector<128x128xf32>
    %cst_9 = arith.constant 5.000000e-01 : f32
    %16 = vector.broadcast %cst_9 : f32 to vector<128x128xf32>
    %17 = arith.mulf %16, %14 : vector<128x128xf32>
    %cst_10 = arith.constant 0.0356774069 : f32
    %18 = vector.broadcast %cst_10 : f32 to vector<128x128xf32>
    %19 = arith.mulf %18, %15 : vector<128x128xf32>
    %cst_11 = arith.constant 0.797884583 : f32
    %20 = vector.broadcast %cst_11 : f32 to vector<128x128xf32>
    %21 = arith.addf %20, %19 : vector<128x128xf32>
    %22 = arith.mulf %14, %21 : vector<128x128xf32>
    %23 = math.tanh %22 : vector<128x128xf32>
    %cst_12 = arith.constant 1.000000e+00 : f32
    %24 = vector.broadcast %cst_12 : f32 to vector<128x128xf32>
    %25 = arith.addf %24, %23 : vector<128x128xf32>
    %26 = arith.mulf %17, %25 : vector<128x128xf32>
    %27 = arith.truncf %26 : vector<128x128xf32> to vector<128x128xbf16>
    %c0_13 = arith.constant 0 : index
    %c0_14 = arith.constant 0 : index
    %28 = vector.load %arg10[%c0_13, %c0_14] : memref<128x128xbf16, #tpu.memory_space<vmem>>, vector<128x128xbf16>
    %cst_15 = arith.constant dense<0.000000e+00> : vector<128x128xf32>
    %29 = tpu.matmul %28, %27, %cst_15 {dimension_numbers = #tpu.dot_dimension_numbers<[1], [0], [0], [1], [0, 0, 1, 1], [], []>} : vector<128x128xbf16>, vector<128x128xbf16>, vector<128x128xf32> -> vector<128x128xf32>
    %c0_16 = arith.constant 0 : index
    %c0_17 = arith.constant 0 : index
    %30 = vector.load %arg11[%c0_16, %c0_17] : memref<128x1xf32, #tpu.memory_space<vmem>>, vector<128x1xf32>
    %31 = vector.broadcast %30 : vector<128x1xf32> to vector<128x128xf32>
    %32 = arith.addf %29, %31 : vector<128x128xf32>
    %33 = arith.mulf %32, %32 : vector<128x128xf32>
    %cst_18 = arith.constant 5.000000e-01 : f32
    %34 = vector.broadcast %cst_18 : f32 to vector<128x128xf32>
    %35 = arith.mulf %34, %32 : vector<128x128xf32>
    %cst_19 = arith.constant 0.0356774069 : f32
    %36 = vector.broadcast %cst_19 : f32 to vector<128x128xf32>
    %37 = arith.mulf %36, %33 : vector<128x128xf32>
    %cst_20 = arith.constant 0.797884583 : f32
    %38 = vector.broadcast %cst_20 : f32 to vector<128x128xf32>
    %39 = arith.addf %38, %37 : vector<128x128xf32>
    %40 = arith.mulf %32, %39 : vector<128x128xf32>
    %41 = math.tanh %40 : vector<128x128xf32>
    %cst_21 = arith.constant 1.000000e+00 : f32
    %42 = vector.broadcast %cst_21 : f32 to vector<128x128xf32>
    %43 = arith.addf %42, %41 : vector<128x128xf32>
    %44 = arith.mulf %35, %43 : vector<128x128xf32>
    %45 = arith.truncf %44 : vector<128x128xf32> to vector<128x128xbf16>
    %c0_22 = arith.constant 0 : index
    %c0_23 = arith.constant 0 : index
    %46 = vector.load %arg12[%c0_22, %c0_23] : memref<128x128xbf16, #tpu.memory_space<vmem>>, vector<128x128xbf16>
    %cst_24 = arith.constant dense<0.000000e+00> : vector<128x128xf32>
    %47 = tpu.matmul %46, %45, %cst_24 {dimension_numbers = #tpu.dot_dimension_numbers<[1], [0], [0], [1], [0, 0, 1, 1], [], []>} : vector<128x128xbf16>, vector<128x128xbf16>, vector<128x128xf32> -> vector<128x128xf32>
    %c0_25 = arith.constant 0 : index
    %c0_26 = arith.constant 0 : index
    %48 = vector.load %arg13[%c0_25, %c0_26] : memref<128x1xf32, #tpu.memory_space<vmem>>, vector<128x1xf32>
    %49 = vector.broadcast %48 : vector<128x1xf32> to vector<128x128xf32>
    %50 = arith.addf %47, %49 : vector<128x128xf32>
    %51 = arith.mulf %50, %50 : vector<128x128xf32>
    %cst_27 = arith.constant 5.000000e-01 : f32
    %52 = vector.broadcast %cst_27 : f32 to vector<128x128xf32>
    %53 = arith.mulf %52, %50 : vector<128x128xf32>
    %cst_28 = arith.constant 0.0356774069 : f32
    %54 = vector.broadcast %cst_28 : f32 to vector<128x128xf32>
    %55 = arith.mulf %54, %51 : vector<128x128xf32>
    %cst_29 = arith.constant 0.797884583 : f32
    %56 = vector.broadcast %cst_29 : f32 to vector<128x128xf32>
    %57 = arith.addf %56, %55 : vector<128x128xf32>
    %58 = arith.mulf %50, %57 : vector<128x128xf32>
    %59 = math.tanh %58 : vector<128x128xf32>
    %cst_30 = arith.constant 1.000000e+00 : f32
    %60 = vector.broadcast %cst_30 : f32 to vector<128x128xf32>
    %61 = arith.addf %60, %59 : vector<128x128xf32>
    %62 = arith.mulf %53, %61 : vector<128x128xf32>
    %63 = arith.truncf %62 : vector<128x128xf32> to vector<128x128xbf16>
    %c0_31 = arith.constant 0 : index
    %c0_32 = arith.constant 0 : index
    %64 = vector.load %arg14[%c0_31, %c0_32] : memref<3x128xbf16, #tpu.memory_space<vmem>>, vector<3x128xbf16>
    %cst_33 = arith.constant dense<0.000000e+00> : vector<3x128xf32>
    %65 = tpu.matmul %64, %63, %cst_33 {dimension_numbers = #tpu.dot_dimension_numbers<[1], [0], [0], [1], [0, 0, 1, 1], [], []>} : vector<3x128xbf16>, vector<128x128xbf16>, vector<3x128xf32> -> vector<3x128xf32>
    %c0_34 = arith.constant 0 : index
    %c0_35 = arith.constant 0 : index
    %66 = vector.load %arg15[%c0_34, %c0_35] : memref<3x1xf32, #tpu.memory_space<vmem>>, vector<3x1xf32>
    %67 = vector.broadcast %66 : vector<3x1xf32> to vector<3x128xf32>
    %68 = arith.addf %65, %67 : vector<3x128xf32>
    %c0_36 = arith.constant 0 : index
    %c0_37 = arith.constant 0 : index
    %c0_38 = arith.constant 0 : index
    %69 = vector.load %arg16[%c0_36, %c0_37, %c0_38] : memref<1x3x128xf32, #tpu.memory_space<vmem>>, vector<1x3x128xf32>
    %70 = vector.shape_cast %69 : vector<1x3x128xf32> to vector<3x128xf32>
    %71 = vector.shape_cast %68 : vector<3x128xf32> to vector<1x3x128xf32>
    tpu.vector_store %arg16[%c0_36, %c0_37, %c0_38], %71 {strides = array<i32>} : memref<1x3x128xf32, #tpu.memory_space<vmem>>, vector<1x3x128xf32>,
    return
  }
  func.func @transform_0(%arg0: i32, %arg1: i32) -> (i32, i32, i32) {
    %c0_i32 = arith.constant 0 : i32
    %c0_i32_0 = arith.constant 0 : i32
    %c0_i32_1 = arith.constant 0 : i32
    return %c0_i32, %c0_i32_0, %arg0 : i32, i32, i32
  }
  func.func @transform_1(%arg0: i32, %arg1: i32) -> (i32, i32, i32) {
    %c0_i32 = arith.constant 0 : i32
    %c0_i32_0 = arith.constant 0 : i32
    return %arg1, %c0_i32, %arg0 : i32, i32, i32
  }
  func.func @transform_2(%arg0: i32, %arg1: i32) -> (i32, i32) {
    %c0_i32 = arith.constant 0 : i32
    %c0_i32_0 = arith.constant 0 : i32
    %c0_i32_1 = arith.constant 0 : i32
    return %c0_i32, %c0_i32_0 : i32, i32
  }
  func.func @transform_3(%arg0: i32, %arg1: i32) -> (i32, i32) {
    %c0_i32 = arith.constant 0 : i32
    %c0_i32_0 = arith.constant 0 : i32
    %c0_i32_1 = arith.constant 0 : i32
    return %c0_i32, %c0_i32_0 : i32, i32
  }
  func.func @transform_4(%arg0: i32, %arg1: i32) -> (i32, i32) {
    %c0_i32 = arith.constant 0 : i32
    %c0_i32_0 = arith.constant 0 : i32
    %c0_i32_1 = arith.constant 0 : i32
    return %c0_i32, %c0_i32_0 : i32, i32
  }
  func.func @transform_5(%arg0: i32, %arg1: i32) -> (i32, i32) {
    %c0_i32 = arith.constant 0 : i32
    %c0_i32_0 = arith.constant 0 : i32
    %c0_i32_1 = arith.constant 0 : i32
    return %c0_i32, %c0_i32_0 : i32, i32
  }
  func.func @transform_6(%arg0: i32, %arg1: i32) -> (i32, i32) {
    %c0_i32 = arith.constant 0 : i32
    %c0_i32_0 = arith.constant 0 : i32
    %c0_i32_1 = arith.constant 0 : i32
    return %c0_i32, %c0_i32_0 : i32, i32
  }
  func.func @transform_7(%arg0: i32, %arg1: i32) -> (i32, i32) {
    %c0_i32 = arith.constant 0 : i32
    %c0_i32_0 = arith.constant 0 : i32
    %c0_i32_1 = arith.constant 0 : i32
    return %c0_i32, %c0_i32_0 : i32, i32
  }
  func.func @transform_8(%arg0: i32, %arg1: i32) -> (i32, i32) {
    %c0_i32 = arith.constant 0 : i32
    %c0_i32_0 = arith.constant 0 : i32
    %c0_i32_1 = arith.constant 0 : i32
    return %c0_i32, %c0_i32_0 : i32, i32
  }
  func.func @transform_9(%arg0: i32, %arg1: i32) -> (i32, i32) {
    %c0_i32 = arith.constant 0 : i32
    %c0_i32_0 = arith.constant 0 : i32
    %c0_i32_1 = arith.constant 0 : i32
    return %c0_i32, %c0_i32_0 : i32, i32
  }
  func.func @transform_10(%arg0: i32, %arg1: i32) -> (i32, i32) {
    %c0_i32 = arith.constant 0 : i32
    %c0_i32_0 = arith.constant 0 : i32
    %c0_i32_1 = arith.constant 0 : i32
    return %c0_i32, %c0_i32_0 : i32, i32
  }
  func.func @transform_11(%arg0: i32, %arg1: i32) -> (i32, i32) {
    %c0_i32 = arith.constant 0 : i32
    %c0_i32_0 = arith.constant 0 : i32
    %c0_i32_1 = arith.constant 0 : i32
    return %c0_i32, %c0_i32_0 : i32, i32
  }
  func.func @transform_12(%arg0: i32, %arg1: i32) -> (i32, i32) {
    %c0_i32 = arith.constant 0 : i32
    %c0_i32_0 = arith.constant 0 : i32
    %c0_i32_1 = arith.constant 0 : i32
    return %c0_i32, %c0_i32_0 : i32, i32
  }
  func.func @transform_13(%arg0: i32, %arg1: i32) -> (i32, i32) {
    %c0_i32 = arith.constant 0 : i32
    %c0_i32_0 = arith.constant 0 : i32
    %c0_i32_1 = arith.constant 0 : i32
    return %c0_i32, %c0_i32_0 : i32, i32
  }
  func.func @transform_14(%arg0: i32, %arg1: i32) -> (i32, i32, i32) {
    %c0_i32 = arith.constant 0 : i32
    %c0_i32_0 = arith.constant 0 : i32
    return %arg1, %c0_i32, %arg0 : i32, i32, i32
  }
}

</mosaic_0001>

<bundles_post_ra>
// kernel: tpu_custom_call.1
= control target key start
LH: loop header
LB: loop body
LE: loop exit
PB: predicated region body
PF: predicated region fallthrough
CT: control target
= control target key end

     0   :  { %s3763_s0 = inlined_call_operand.vmem [shape: f32[1,20,256], index: 0, kind: input, shape index: {}]   ;;  %s3764_s1 = inlined_call_operand.vmem [shape: bf16[2,36,256], index: 1, kind: input, shape index: {}]   ;;  %s3765_s2 = inlined_call_operand.vmem [shape: f32[36,20], index: 2, kind: input, shape index: {}]   ;;  %s3766_s3 = inlined_call_operand.vmem [shape: f32[36,1], index: 3, kind: input, shape index: {}]   ;;  %s3767_s4 = inlined_call_operand.vmem [shape: f32[36,36], index: 4, kind: input, shape index: {}]   ;;  %s3768_s5 = inlined_call_operand.vmem [shape: f32[36,1], index: 5, kind: input, shape index: {}]   ;;  %s3769_s6 = inlined_call_operand.vmem [shape: bf16[128,36], index: 6, kind: input, shape index: {}]   ;;  %s3770_s7 = inlined_call_operand.vmem [shape: f32[128,1], index: 7, kind: input, shape index: {}]   ;;  %s3771_s8 = inlined_call_operand.vmem [shape: bf16[128,128], index: 8, kind: input, shape index: {}]   ;;  %s3772_s9 = inlined_call_operand.vmem [shape: f32[128,1], index: 9, kind: input, shape index: {}]   ;;  %s3773_s10 = inlined_call_operand.vmem [shape: bf16[128,128], index: 10, kind: input, shape index: {}]   ;;  %s3774_s11 = inlined_call_operand.vmem [shape: f32[128,1], index: 11, kind: input, shape index: {}]   ;;  %s3775_s12 = inlined_call_operand.vmem [shape: bf16[3,128], index: 12, kind: input, shape index: {}]   ;;  %s3776_s13 = inlined_call_operand.vmem [shape: f32[3,1], index: 13, kind: input, shape index: {}]   ;;  %s3777_s14 = inlined_call_operand.vmem [shape: f32[2,3,256], index: 14, kind: output, shape index: {}]  }
   0x1   :  { %3785 = sst [smem:[#allocation7_spill]] %s3763_s0 }
   0x2   :  { %3786 = sst [smem:[#allocation8_spill]] %s3769_s6 }
   0x3   :  { %3787 = sst [smem:[#allocation9_spill]] %s3771_s8 }
   0x4   :  { %3788 = sst [smem:[#allocation10_spill]] %s3772_s9 }
   0x5   :  { %3789 = sst [smem:[#allocation11_spill]] %s3773_s10 }
   0x6   :  { %3790 = sst [smem:[#allocation12_spill]] %s3774_s11 }
   0x7   :  { %3791 = sst [smem:[#allocation13_spill]] %s3775_s12 }
   0x8   :  { %3792 = sst [smem:[#allocation14_spill]] %s3776_s13 }
   0x9   :  { %s3055_s29 = smov 0   ;;  %s3057_s30 = smov 0  }
   0xa   :  { %s3059_s15 = smov 0   ;;  %s3061_s16 = smov 0  }
   0xb   :  { %s3063_s17 = smov 0   ;;  %s3065_s18 = smov 0  }
   0xc   :  { %s3067_s19 = smov 0   ;;  %s3069_s20 = smov 0  }
   0xd   :  { %s3071_s21 = smov 0  }
   0xe LB: > { %s33_s22 = sadd.s32 1, %s2963_s19  ;;  %s36_s23 = sadd.s32 1, %s2967_s20  ;;  %s2971_s21 = sphi %s3071_s21, %s24_s21   ;;  %s2967_s20 = sphi %s3069_s20, %s3815_s20   ;;  %s2963_s19 = sphi %s3067_s19, %s3814_s19   ;;  %s2959_s18 = sphi %s3065_s18, %s3813_s18   ;;  %s2955_s17 = sphi %s3063_s17, %s3812_s17   ;;  %s2951_s16 = sphi %s3061_s16, %s3811_s16   ;;  %s2947_s15 = sphi %s3059_s15, %s3810_s15   ;;  %s2943_s30 = sphi %s3057_s30, %s3809_s30   ;;  %s2939_s29 = sphi %s3055_s29, %s3808_s29  }
   0xf   : > { %p34_p0 = scmp.ge.s32.totalorder %s33_s22, 2  ;;  %p50_p1 = scmp.ne.s32.totalorder %s2951_s16, %s2947_s15 }
  0x10   : > { %p51_p2 = scmp.eq.s32.totalorder %s2971_s21, 0  ;;  %p78_p5 = scmp.ne.s32.totalorder %s2943_s30, %s2939_s29 }
  0x11   : > { %s3817_s22 = smov (%p34_p0, %s33_s22), 0  ;;  %s3819_s23 = smov (!%p34_p0, %s36_s23), %s2967_s20 }
  0x12   : > { %3793 = sst [smem:[#allocation5_spill]] %s3817_s22  ;;  %p3108_p3 = por %p51_p2, %p50_p1 }
  0x13   : > { %p38_p4 = scmp.ge.s32.totalorder %s3819_s23, 2  ;;  %s66_s25 = ssub.s32 %s2963_s19, %s3817_s22 }
  0x14   : > { %s43_s26 = sadd.s32 1, %s2951_s16  ;;  %p3119_p6 = por %p78_p5, %p51_p2 }
  0x15   : > { %s3821_s23 = smov (%p38_p4, %s3819_s23), 0  ;;  %s71_s12 = sadd.s32 1, %s2943_s30 }
  0x16   : > { %3795 = sst [smem:[#allocation6_spill]] %s3821_s23  ;;  %s40_s28 = ssub.s32 %s2967_s20, %s3821_s23 }
  0x17   : > { %p41_p7 = scmp.eq.s32.totalorder %s40_s28, 0  ;;  %s68_s10 = sor.u32 %s66_s25, %s40_s28 }
  0x18   : > { %p69_p8 = scmp.eq.s32.totalorder %s68_s10, 0  ;;  %p2359_p9 = scmp.ge.s32.totalorder %s2971_s21, 4 }
  0x19   : > { %s3127_s8 = scalar_select %p41_p7, %s2951_s16, %s43_s26  }
  0x1a   : > { %s3130_s13 = scalar_select %p69_p8, %s2943_s30, %s71_s12  }
  0x1b   : > { %420 = sbr.rel (%p2359_p9) target bundleno = 56 (0x38), region = 64 }
  0x22   : > { %423 = sbr.rel (!%p3108_p3) target bundleno = 46 (0x2e), region = 68  ;;  %s425_s22 = sand.u32 (%p3108_p3), 1, %s2951_s16  }
  0x23   : > { %s2360_s11 = sshll.u32 (%p3108_p3), %s2967_s20, 3  ;;  %s2683_s9 = smul.u32 (%p3108_p3), 24, %s425_s22 }
  0x24   : > { %s3797_s0 = sld [smem:[#allocation7_spill]] (%p3108_p3) }
  0x25   : > { %s427_s10 = scalar_lea.vmem (%p3108_p3), [#allocation3], %s2683_s9 }
  0x2a   : > { %s429_s25 = scalar_lea.vmem %s3797_s0, %s2360_s11 }
  0x2b   : > { %v461_v0 = vld [vmem:[%s429_s25] sm:$0xff]  ;;  %v463_v1 = vld [vmem:[%s429_s25 + $0x10] sm:$0xff] }
  0x2c   : > { %v465_v2 = vld [vmem:[%s429_s25 + $0x20] sm:$0xff]  ;;  %462 = vst [vmem:[%s427_s10] sm:$0xff] %v461_v0  ;;  %464 = vst [vmem:[%s427_s10 + $0x8] sm:$0xff] %v463_v1 }
  0x2d   : > { %466 = vst [vmem:[%s427_s10 + $0x10] sm:$0xff] %v465_v2 }
  0x2e PF: > { %472 = sbr.rel (!%p3119_p6) target bundleno = 56 (0x38), region = 106  ;;  %s474_s12 = sand.u32 (%p3119_p6), 1, %s2943_s30  }
  0x2f   : > { %s2685_s22 = smul.u32 (%p3119_p6), 10, %s2963_s19 }
  0x30   : > { %s2684_s24 = smul.u32 (%p3119_p6), 20, %s474_s12 }
  0x31   : > { %s478_s26 = sadd.s32 (%p3119_p6), %s2967_s20, %s2685_s22 }
  0x32   : > { %s2361_s6 = sshll.u32 (%p3119_p6), %s478_s26, 2  ;;  %s476_s9 = scalar_lea.vmem (%p3119_p6), [#allocation4], %s2684_s24 }
  0x33   : > { %s480_s28 = scalar_lea.vmem (%p3119_p6), %s3764_s1, %s2361_s6 }
  0x34   : > { %v496_v3 = vld [vmem:[%s480_s28] sm:$0xf] (%p3119_p6)  ;;  %v498_v4 = vld [vmem:[%s480_s28 + $0x8] sm:$0xf] (%p3119_p6)  ;;  %v500_v5 = vld [vmem:[%s480_s28 + $0x10] sm:$0xf] (%p3119_p6) }
  0x35   : > { %497 = vst [vmem:[%s476_s9] sm:$0xf] %v496_v3  ;;  %499 = vst [vmem:[%s476_s9 + $0x4] sm:$0xf] %v498_v4  ;;  %v502_v6 = vld [vmem:[%s480_s28 + $0x18] sm:$0xf] }
  0x36   : > { %501 = vst [vmem:[%s476_s9 + $0x8] sm:$0xf] %v500_v5  ;;  %v504_v7 = vld [vmem:[%s480_s28 + $0x20] sm:$0xf]  ;;  %503 = vst [vmem:[%s476_s9 + $0xc] sm:$0xf] %v502_v6 }
  0x37   : > { %505 = vst [vmem:[%s476_s9 + $0x10] sm:$0xf] %v504_v7 }
  0x38 PF: > { %p2362_p10 = scmp.ge.s32.totalorder %s2971_s21, 1  ;;  %p537_p11 = scmp.lt.s32.totalorder %s2971_s21, 5 }
  0x3a   : > { %p538_p12 = pnand %p2362_p10, %p537_p11 }
  0x3b   : > { %s544_s27 = sand.u32 (!%p538_p12), 1, %s2947_s15   ;;  %s551_s25 = sand.u32 (!%p538_p12), 1, %s2939_s29  }
  0x3c   : > { %541 = sbr.rel (%p538_p12) target bundleno = 1634 (0x662), region = 147  ;;  %p603_p13 = scmp.lt.s32.totalorder (!%p538_p12), %s2955_s17, 1 }
  0x3d   : > { %s2686_s10 = smul.u32 (!%p538_p12), 24, %s544_s27  ;;  %p605_p0 = scmp.lt.s32.totalorder (!%p538_p12), %s2959_s18, 1 }
  0x3e   : > { %s2687_s12 = smul.u32 (!%p538_p12), 20, %s551_s25  ;;  %p2365_p1 = scmp.ne.s32.totalorder (!%p538_p12), %s2955_s17, 0 }
  0x3f   : > { %s546_s9 = scalar_lea.vmem (!%p538_p12), [#allocation3], %s2686_s10 }
  0x40   : > { %s3161_s0 = scalar_lea.vmem (!%p538_p12), [#allocation4], %s2687_s12 }
  0x43   : > { %s604_s22 = scalar_select %p603_p13, %s2955_s17, 1 }
  0x44   : > { %s3823_s18 = smov (!%p605_p0, %s2959_s18), 1  ;;  %615 = sbr.rel (%p2365_p1) target bundleno = 566 (0x236), region = 159 }
  0x45   : > { %s2363_s24 = sshll.u32 %s604_s22, 1  ;;  %v616_v8 = vld [vmem:[%s546_s9] sm:$0xff] (!%p2365_p1)  ;;  %v617_v9 = vld [vmem:[%s546_s9 + $0x8] sm:$0xff] (!%p2365_p1)  ;;  %v2973_v10 = vmov (!%p2365_p1), 0.0|0.0   ;;  %vm2974_vm0 = vmmov (!%p2365_p1), 0   ;;  %v2975_v12 = vmov (!%p2365_p1), 0.0  }
  0x46   : > { %s608_s26 = sadd.s32 %s2363_s24, %s3823_s18  ;;  %2673 = vmatprep.subr.bf16.mxu0 (!%p2365_p1), %v2973_v10  ;;  %v2674_v11 = vpack.c.bf16 (!%p2365_p1), %v617_v9, %v616_v8  ;;  %2676 = vmatprep.subr.bf16.mxu1 (!%p2365_p1), %v2973_v10  ;;  %v624_v13 = vld [vmem:[%s3766_s3] sm:$0xff] (!%p2365_p1)  ;;  %v2976_v14 = vmov (!%p2365_p1), 0   ;;  %v626_v15 = vld [vmem:[%s3766_s3 + $0x10] sm:$0xff] (!%p2365_p1)  ;;  %vm670_vm1 = vcmask (!%p2365_p1), 1043456   ;;  %vm654_vm2 = vcmask (!%p2365_p1), 162816   ;;  %v625_v18 = vld [vmem:[%s3766_s3 + $0x8] sm:$0xff] (!%p2365_p1) }
  0x47   : > { %s2364_s6 = sshll.u32 %s608_s26, 2  ;;  %2527 = vmatprep.mubr.msk.f32.mxu0 (!%p2365_p1), %vm2974_vm0, %v2975_v12  ;;  %2552 = vmatprep.mubr.msk.f32.mxu1 (!%p2365_p1), %vm2974_vm0, %v2975_v12  ;;  %v618_v16 = vld [vmem:[%s546_s9 + $0x10] sm:$0xf] (!%p2365_p1)  ;;  %v620_v20 = vld [vmem:[%s3765_s2 + $0x8] sm:$0xff] (!%p2365_p1)  ;;  %v628_v21 = vld [vmem:[%s3766_s3 + $0x20] sm:$0xf] (!%p2365_p1) }
  0x48   : > { %s3159_s28 = scalar_lea.vmem %s3777_s14, %s2364_s6  ;;  %2675 = vmatpush3.bf16.msra.mxu0 (!%p2365_p1), %v2674_v11  ;;  %2767 = vset.pattern.permute.xlu0 (!%p2365_p1), %v2976_v14  ;;  %v619_v17 = vld [vmem:[%s3765_s2] sm:$0xff] (!%p2365_p1)  ;;  %v627_v19 = vld [vmem:[%s3766_s3 + $0x18] sm:$0xff] (!%p2365_p1)  ;;  %v621_v23 = vld [vmem:[%s3765_s2 + $0x10] sm:$0xff] (!%p2365_p1)  ;;  %vm839_vm3 = vcmask (!%p2365_p1), 293888  }
  0x49   : > { %2525 = vmatprep.subr.mxu0 (!%p2365_p1), %v2975_v12  ;;  %631 = vperm.xlu0 (!%p2365_p1), %2767, %v624_v13   ;;  %v809_v22 = vld [vmem:[%s3768_s5] sm:$0xff] (!%p2365_p1)  ;;  %v810_v24 = vld [vmem:[%s3768_s5 + $0x8] sm:$0xff] (!%p2365_p1)  ;;  %v811_v25 = vld [vmem:[%s3768_s5 + $0x10] sm:$0xff] (!%p2365_p1) }
  0x4a   : > { %2768 = vset.pattern.permute.xlu1 (!%p2365_p1), %v2976_v14  ;;  %v622_v26 = vld [vmem:[%s3765_s2 + $0x18] sm:$0xff] (!%p2365_p1)  ;;  %v813_v28 = vld [vmem:[%s3768_s5 + $0x20] sm:$0xf] (!%p2365_p1) }
  0x4b   : > { %641 = vperm.xlu1 %2768, %v626_v15   ;;  %v812_v27 = vld [vmem:[%s3768_s5 + $0x18] sm:$0xff]  ;;  %v623_v29 = vld [vmem:[%s3765_s2 + $0x20] sm:$0xf] }
  0x4c   : > { %2526 = vmatpush3.msk.msra.mxu0 %vm670_vm1, %v618_v16 }
  0x4d   : > { %2528 = vmatmul.mubr.msk.f32.vlgmr.msra.gmra.mrb[0].mxu0 %vm654_vm2, %v619_v17  ;;  %636 = vperm.xlu0 %2767, %v625_v18  }
  0x4e   : > { %2530 = vmatprep.mubr.msk.f32.mxu0 %vm2974_vm0, %v2975_v12 }
  0x4f   : > { %646 = vperm.xlu1 %2768, %v627_v19  }
  0x51   : > { %2531 = vmatmul.mubr.msk.f32.gmra.mrb[2].mxu0 %vm654_vm2, %v620_v20  ;;  %651 = vperm.xlu0 %2767, %v628_v21  }
  0x52   : > { %2533 = vmatprep.mubr.msk.f32.mxu0 %vm2974_vm0, %v2975_v12 }
  0x53   : > { %816 = vperm.xlu1 %2768, %v809_v22  }
  0x55   : > { %2534 = vmatmul.mubr.msk.f32.gmra.mrb[4].mxu0 %vm654_vm2, %v621_v23  ;;  %821 = vperm.xlu0 %2767, %v810_v24  }
  0x56   : > { %2536 = vmatprep.mubr.msk.f32.mxu0 %vm2974_vm0, %v2975_v12 }
  0x57   : > { %826 = vperm.xlu1 %2768, %v811_v25  }
  0x59   : > { %2537 = vmatmul.mubr.msk.f32.gmra.mrb[6].mxu0 %vm654_vm2, %v622_v26  ;;  %831 = vperm.xlu0 %2767, %v812_v27  }
  0x5a   : > { %2539 = vmatprep.mubr.msk.f32.mxu0 %vm2974_vm0, %v2975_v12 }
  0x5b   : > { %836 = vperm.xlu1 %2768, %v813_v28  }
  0x5d   : > { %2540 = vmatmul.mubr.msk.f32.gmra.mrb[8].mxu0 %vm654_vm2, %v623_v29 }
  0xc8   : > { %v632_v30 = vpop.permute.xlu0 %631 }
  0xca   : > { %v642_v40 = vpop.permute.xlu1 %641 }
  0xcc   : > { %v637_v35 = vpop.permute.xlu0 %636 }
  0xce   : > { %v647_v50 = vpop.permute.xlu1 %646 }
  0xd0   : > { %v652_v58 = vpop.permute.xlu0 %651 }
 0x120   : > { %v740_v31 = vpop.f32.mrb[0].mxu0 }
 0x121   : > { %v741_v32 = vadd.f32 %v740_v31, %v632_v30  ;;  %v2529_v33 = vpop.f32.mrb[1].mxu0  ;;  %v804_v30 = vld [vmem:[%s3767_s4] sm:$0xff]  ;;  %v806_v31 = vld [vmem:[%s3767_s4 + $0x10] sm:$0xff] }
 0x122   : > { %v808_v33 = vld [vmem:[%s3767_s4 + $0x20] sm:$0xf] }
 0x123   : > { %v764_v34 = vmul.f32 %v741_v32, %v741_v32  ;;  %v769_v9 = vmul.f32 0.5, %v741_v32 }
 0x124   : > { %v745_v36 = vpop.f32.mrb[2].mxu0 }
 0x125   : > { %v774_v37 = vmul.f32 0.035677407, %v764_v34  ;;  %v746_v38 = vadd.f32 %v745_v36, %v637_v35  ;;  %v2532_v39 = vpop.f32.mrb[3].mxu0  ;;  %v817_v36 = vpop.permute.xlu1 %816 }
 0x127   : > { %v779_v41 = vadd.f32 0.7978846, %v774_v37  ;;  %v765_v42 = vmul.f32 %v746_v38, %v746_v38  ;;  %v770_v11 = vmul.f32 0.5, %v746_v38  ;;  %v822_v37 = vpop.permute.xlu0 %821 }
 0x128   : > { %v750_v43 = vpop.f32.mrb[4].mxu0 }
 0x129   : > { %v784_v44 = vmul.f32 %v779_v41, %v741_v32  ;;  %v775_v45 = vmul.f32 0.035677407, %v765_v42  ;;  %v751_v46 = vadd.f32 %v750_v43, %v642_v40  ;;  %v2535_v47 = vpop.f32.mrb[5].mxu0  ;;  %v807_v32 = vld [vmem:[%s3767_s4 + $0x18] sm:$0xff] }
 0x12b   : > { %2769 = vtanh.f32 %v784_v44  ;;  %v780_v48 = vadd.f32 0.7978846, %v775_v45  ;;  %v766_v49 = vmul.f32 %v751_v46, %v751_v46  ;;  %v771_v20 = vmul.f32 0.5, %v751_v46  ;;  %v827_v45 = vpop.permute.xlu1 %826 }
 0x12c   : > { %v755_v51 = vpop.f32.mrb[6].mxu0 }
 0x12d   : > { %v785_v52 = vmul.f32 %v780_v48, %v746_v38  ;;  %v776_v53 = vmul.f32 0.035677407, %v766_v49  ;;  %v756_v54 = vadd.f32 %v755_v51, %v647_v50  ;;  %v2538_v55 = vpop.f32.mrb[7].mxu0 }
 0x12f   : > { %2771 = vtanh.f32 %v785_v52  ;;  %v781_v56 = vadd.f32 0.7978846, %v776_v53  ;;  %v767_v57 = vmul.f32 %v756_v54, %v756_v54  ;;  %v772_v21 = vmul.f32 0.5, %v756_v54  ;;  %v837_v51 = vpop.permute.xlu1 %836 }
 0x130   : > { %v760_v59 = vpop.f32.mrb[8].mxu0 }
 0x131   : > { %v786_v60 = vmul.f32 %v781_v56, %v751_v46  ;;  %v777_v61 = vmul.f32 0.035677407, %v767_v57  ;;  %v761_v62 = vadd.f32 %v760_v59, %v652_v58  ;;  %v2541_v63 = vpop.f32.mrb[9].mxu0  ;;  %v832_v46 = vpop.permute.xlu0 %831 }
 0x133   : > { %2773 = vtanh.f32 %v786_v60  ;;  %v782_v0 = vadd.f32 0.7978846, %v777_v61  ;;  %v768_v1 = vmul.f32 %v761_v62, %v761_v62  ;;  %v773_v28 = vmul.f32 0.5, %v761_v62 }
 0x135   : > { %v2770_v2 = vpop.eup %2769  ;;  %v787_v3 = vmul.f32 %v782_v0, %v756_v54  ;;  %v778_v4 = vmul.f32 0.035677407, %v768_v1 }
 0x136   : > { %v794_v6 = vadd.f32 1.0, %v2770_v2 }
 0x137   : > { %2775 = vtanh.f32 %v787_v3  ;;  %v783_v5 = vadd.f32 0.7978846, %v778_v4 }
 0x138   : > { %v799_v14 = vmul.f32 %v794_v6, %v769_v9 }
 0x139   : > { %v2772_v7 = vpop.eup %2771  ;;  %v788_v8 = vmul.f32 %v783_v5, %v761_v62 }
 0x13a   : > { %v795_v13 = vadd.f32 1.0, %v2772_v7 }
 0x13b   : > { %2777 = vtanh.f32 %v788_v8 }
 0x13c   : > { %v800_v15 = vmul.f32 %v795_v13, %v770_v11 }
 0x13d   : > { %v2774_v16 = vpop.eup %2773 }
 0x13e   : > { %v2677_v17 = vpack.c.bf16 %v800_v15, %v799_v14  ;;  %v796_v18 = vadd.f32 1.0, %v2774_v16 }
 0x140   : > { %2678 = vmatpush3.bf16.msra.mxu1 %v2677_v17  ;;  %v801_v23 = vmul.f32 %v796_v18, %v771_v20 }
 0x141   : > { %v2776_v19 = vpop.eup %2775  ;;  %2679 = vmatprep.subr.bf16.mxu1 %v2973_v10  ;;  %v805_v10 = vld [vmem:[%s3767_s4 + $0x8] sm:$0xff] }
 0x142   : > { %v797_v22 = vadd.f32 1.0, %v2776_v19 }
 0x144   : > { %v802_v24 = vmul.f32 %v797_v22, %v772_v21 }
 0x145   : > { %v2778_v25 = vpop.eup %2777 }
 0x146   : > { %v798_v26 = vadd.f32 1.0, %v2778_v25  ;;  %v2680_v27 = vpack.c.bf16 %v802_v24, %v801_v23 }
 0x148   : > { %2681 = vmatpush3.bf16.msra.mxu1 %v2680_v27  ;;  %v803_v29 = vmul.f32 %v798_v26, %v773_v28 }
 0x149   : > { %2550 = vmatprep.subr.mxu1 %v2975_v12 }
 0x14c   : > { %2551 = vmatpush3.msk.msra.mxu1 %vm670_vm1, %v803_v29 }
 0x14d   : > { %2553 = vmatmul.mubr.msk.f32.vlgmr.msra.gmra.mrb[0].mxu1 %vm839_vm3, %v804_v30 }
 0x14e   : > { %2555 = vmatprep.mubr.msk.f32.mxu1 %vm2974_vm0, %v2975_v12 }
 0x151   : > { %2556 = vmatmul.mubr.msk.f32.gmra.mrb[2].mxu1 %vm839_vm3, %v805_v10 }
 0x152   : > { %2558 = vmatprep.mubr.msk.f32.mxu1 %vm2974_vm0, %v2975_v12 }
 0x155   : > { %2559 = vmatmul.mubr.msk.f32.gmra.mrb[4].mxu1 %vm839_vm3, %v806_v31 }
 0x156   : > { %2561 = vmatprep.mubr.msk.f32.mxu1 %vm2974_vm0, %v2975_v12 }
 0x159   : > { %2562 = vmatmul.mubr.msk.f32.gmra.mrb[6].mxu1 %vm839_vm3, %v807_v32 }
 0x15a   : > { %2564 = vmatprep.mubr.msk.f32.mxu1 %vm2974_vm0, %v2975_v12 }
 0x15d   : > { %2565 = vmatmul.mubr.msk.f32.gmra.mrb[8].mxu1 %vm839_vm3, %v808_v33 }
 0x220   : > { %v924_v34 = vpop.f32.mrb[0].mxu1 }
 0x221   : > { %v2554_v35 = vpop.f32.mrb[1].mxu1  ;;  %v925_v39 = vadd.f32 %v924_v34, %v817_v36 }
 0x224   : > { %v929_v38 = vpop.f32.mrb[2].mxu1 }
 0x225   : > { %v930_v40 = vadd.f32 %v929_v38, %v822_v37  ;;  %v2557_v41 = vpop.f32.mrb[3].mxu1 }
 0x227   : > { %v2425_v42 = vpack.c.bf16 %v930_v40, %v925_v39 }
 0x228   : > { %v934_v43 = vpop.f32.mrb[4].mxu1 }
 0x229   : > { %2426 = vst [vmem:[#allocation2] sm:$0xff] %v2425_v42   ;;  %v2560_v44 = vpop.f32.mrb[5].mxu1  ;;  %v935_v47 = vadd.f32 %v934_v43, %v827_v45 }
 0x22c   : > { %v939_v12 = vpop.f32.mrb[6].mxu1 }
 0x22d   : > { %v940_v48 = vadd.f32 %v939_v12, %v832_v46  ;;  %v2563_v49 = vpop.f32.mrb[7].mxu1 }
 0x22f   : > { %v2430_v50 = vpack.c.bf16 %v940_v48, %v935_v47 }
 0x230   : > { %v944_v52 = vpop.f32.mrb[8].mxu1 }
 0x231   : > { %2448 = vst [vmem:[#allocation2 + $0x8] sm:$0xff] %v2430_v50   ;;  %v945_v53 = vadd.f32 %v944_v52, %v837_v51  ;;  %v2566_v54 = vpop.f32.mrb[9].mxu1 }
 0x233   : > { %v2421_v55 = vpack.c.bf16 %v945_v53, %v945_v53 }
 0x235   : > { %973 = vst [vmem:[#allocation2 + $0x10] sm:$0x3] %v2421_v55 }
 0x236 PF: > { %v1018_v56 = vld [vmem:[%s3770_s7] sm:$0xff]  ;;  %v2977_v59 = vmov 0   ;;  %v1020_v6 = vld [vmem:[%s3770_s7 + $0x10] sm:$0xff]  ;;  %v1019_v11 = vld [vmem:[%s3770_s7 + $0x8] sm:$0xff]  ;;  %vm1154_vm4 = vcmask 293888   ;;  %vm1179_vm5 = vcmask 1041408  }
 0x237   : > { %v2433_v57 = vld [vmem:[%s3161_s0] sm:$0xff]   ;;  %2779 = vset.pattern.permute.xlu0 %v2977_v59  ;;  %v2449_v0 = vld [vmem:[%s3161_s0 + $0x8] sm:$0xff]   ;;  %2780 = vset.pattern.permute.xlu1 %v2977_v59  ;;  %v978_v7 = vld [vmem:[%s3161_s0 + $0x10] sm:$0x3]  ;;  %s3798_s0 = sld [smem:[#allocation8_spill]]  ;;  %s3799_s6 = sld [smem:[#allocation10_spill]] }
 0x238   : > { %v2441_v58 = vld [vmem:[#allocation2] sm:$0xff]   ;;  %v2434_v60 = vunpack.c.l.bf16 %v2433_v57  ;;  %v2435_v61 = vunpack.c.h.bf16 %v2433_v57  ;;  %v2450_v1 = vld [vmem:[#allocation2 + $0x8] sm:$0xff]   ;;  %1036 = vperm.xlu0 %2779, %v1018_v56   ;;  %v2438_v2 = vunpack.c.l.bf16 %v2449_v0  ;;  %v2439_v3 = vunpack.c.h.bf16 %v2449_v0  ;;  %1046 = vperm.xlu1 %2780, %v1020_v6   ;;  %v1021_v15 = vld [vmem:[%s3770_s7 + $0x18] sm:$0xff]  ;;  %s3800_s25 = sld [smem:[#allocation12_spill]]  ;;  %s3801_s23 = sld [smem:[#allocation14_spill]] }
 0x239   : > { %v2442_v62 = vunpack.c.l.bf16 %v2441_v58  ;;  %v2443_v63 = vunpack.c.h.bf16 %v2441_v58  ;;  %v2446_v4 = vunpack.c.l.bf16 %v2450_v1  ;;  %v2447_v5 = vunpack.c.h.bf16 %v2450_v1  ;;  %v1022_v23 = vld [vmem:[%s3770_s7 + $0x20] sm:$0xff]  ;;  %v1023_v24 = vld [vmem:[%s3770_s7 + $0x28] sm:$0xff]  ;;  %v1024_v26 = vld [vmem:[%s3770_s7 + $0x30] sm:$0xff]  ;;  %s3802_s15 = sld [smem:[#allocation9_spill]]  ;;  %s3804_s22 = sld [smem:[#allocation11_spill]] }
 0x23a   : > { %v983_v13 = vunpack.c.l.bf16 %v978_v7  ;;  %v1025_v27 = vld [vmem:[%s3770_s7 + $0x38] sm:$0xff]  ;;  %v1026_v30 = vld [vmem:[%s3770_s7 + $0x40] sm:$0xff]  ;;  %v1027_v31 = vld [vmem:[%s3770_s7 + $0x48] sm:$0xff]  ;;  %vm2979_vm6 = vmmov 0   ;;  %s3805_s29 = sld [smem:[#allocation13_spill]] }
 0x23b   : > { %v994_v8 = vmul.f32 %v2442_v62, %v2434_v60  ;;  %v995_v9 = vmul.f32 %v2443_v63, %v2435_v61  ;;  %v996_v16 = vmul.f32 %v2446_v4, %v2438_v2  ;;  %v997_v17 = vmul.f32 %v2447_v5, %v2439_v3  ;;  %v1028_v32 = vld [vmem:[%s3770_s7 + $0x50] sm:$0xff]  ;;  %v1029_v33 = vld [vmem:[%s3770_s7 + $0x58] sm:$0xff]  ;;  %v1030_v35 = vld [vmem:[%s3770_s7 + $0x60] sm:$0xff] }
 0x23c   : > { %v988_v14 = vld [vmem:[#allocation2 + $0x10] sm:$0x3]  ;;  %1041 = vperm.xlu0 %2779, %v1019_v11   ;;  %1051 = vperm.xlu1 %2780, %v1021_v15   ;;  %v1031_v37 = vld [vmem:[%s3770_s7 + $0x68] sm:$0xff]  ;;  %v1033_v39 = vld [vmem:[%s3770_s7 + $0x78] sm:$0xff] }
 0x23d   : > { %v993_v18 = vunpack.c.l.bf16 %v988_v14  ;;  %v2781_v19 = vld [vmem:[%s3798_s0] sm:$0xff]   ;;  %v999_v20 = vpack.c.bf16 %v995_v9, %v994_v8  ;;  %v1000_v21 = vpack.c.bf16 %v997_v17, %v996_v16  ;;  %v2782_v29 = vld [vmem:[%s3798_s0 + $0x8] sm:$0xff]   ;;  %v2783_v10 = vld [vmem:[%s3798_s0 + $0x10] sm:$0xff]  }
 0x23e   : > { %2573 = vmatprep.mubr.msk.bf16.mxu0 %vm1154_vm4, %v2781_v19  ;;  %v2784_v34 = vld [vmem:[%s3798_s0 + $0x18] sm:$0xff]   ;;  %v2785_v36 = vld [vmem:[%s3798_s0 + $0x20] sm:$0xff]   ;;  %v1032_v38 = vld [vmem:[%s3770_s7 + $0x70] sm:$0xff] }
 0x23f   : > { %v998_v22 = vmul.f32 %v993_v18, %v983_v13  ;;  %2567 = vmatprep.subr.bf16.mxu0 %v999_v20  ;;  %v2786_v40 = vld [vmem:[%s3798_s0 + $0x28] sm:$0xff]   ;;  %v1432_v41 = vld [vmem:[%s3799_s6] sm:$0xff]  ;;  %v2787_v42 = vld [vmem:[%s3798_s0 + $0x30] sm:$0xff]   ;;  %s3803_s27 = smov %s3802_s15 }
 0x240   : > { %2568 = vmatpush3.bf16.msra.mxu0 %v999_v20  ;;  %1056 = vperm.xlu0 %2779, %v1022_v23   ;;  %v1433_v43 = vld [vmem:[%s3799_s6 + $0x8] sm:$0xff]  ;;  %v1434_v44 = vld [vmem:[%s3799_s6 + $0x10] sm:$0xff]  ;;  %v1435_v45 = vld [vmem:[%s3799_s6 + $0x18] sm:$0xff] }
 0x241   : > { %2569 = vmatprep.subr.bf16.mxu0 %v1000_v21  ;;  %v1001_v25 = vpack.c.bf16 %v998_v22, %v998_v22  ;;  %1061 = vperm.xlu1 %2780, %v1023_v24   ;;  %v2788_v46 = vld [vmem:[%s3798_s0 + $0x38] sm:$0xff]   ;;  %v1436_v12 = vld [vmem:[%s3799_s6 + $0x20] sm:$0xff]  ;;  %v1437_v47 = vld [vmem:[%s3799_s6 + $0x28] sm:$0xff] }
 0x242   : > { %v1438_v48 = vld [vmem:[%s3799_s6 + $0x30] sm:$0xff]  ;;  %v1439_v49 = vld [vmem:[%s3799_s6 + $0x38] sm:$0xff]  ;;  %v1440_v50 = vld [vmem:[%s3799_s6 + $0x40] sm:$0xff] }
 0x243   : > { %v1181_v28 = vsel %vm1179_vm5, %v1001_v25, 0  ;;  %v1441_v51 = vld [vmem:[%s3799_s6 + $0x48] sm:$0xff]  ;;  %v1442_v52 = vld [vmem:[%s3799_s6 + $0x50] sm:$0xff]  ;;  %v1443_v53 = vld [vmem:[%s3799_s6 + $0x58] sm:$0xff] }
 0x244   : > { %2570 = vmatpush3.bf16.msra.mxu0 %v1000_v21  ;;  %1066 = vperm.xlu0 %2779, %v1024_v26   ;;  %v1444_v54 = vld [vmem:[%s3799_s6 + $0x60] sm:$0xff]  ;;  %v1445_v55 = vld [vmem:[%s3799_s6 + $0x68] sm:$0xff]  ;;  %v1446_v56 = vld [vmem:[%s3799_s6 + $0x70] sm:$0xff] }
 0x245   : > { %2682 = vmatprep.subr.msk.bf16.mxu0 %vm1179_vm5, %v1001_v25  ;;  %1071 = vperm.xlu1 %2780, %v1025_v27   ;;  %v1447_v57 = vld [vmem:[%s3799_s6 + $0x78] sm:$0xff]  ;;  %v1825_v58 = vld [vmem:[%s3800_s25] sm:$0xff]  ;;  %v1826_v59 = vld [vmem:[%s3800_s25 + $0x8] sm:$0xff] }
 0x246   : > { %v1827_v60 = vld [vmem:[%s3800_s25 + $0x10] sm:$0xff]  ;;  %v1828_v61 = vld [vmem:[%s3800_s25 + $0x18] sm:$0xff]  ;;  %v1829_v62 = vld [vmem:[%s3800_s25 + $0x20] sm:$0xff] }
 0x247   : > { %v1830_v63 = vld [vmem:[%s3800_s25 + $0x28] sm:$0xff]  ;;  %v1831_v0 = vld [vmem:[%s3800_s25 + $0x30] sm:$0xff]  ;;  %v1832_v1 = vld [vmem:[%s3800_s25 + $0x38] sm:$0xff] }
 0x248   : > { %2572 = vmatpush3.bf16.msra.mxu0 %v1181_v28  ;;  %1076 = vperm.xlu0 %2779, %v1026_v30   ;;  %v1833_v2 = vld [vmem:[%s3800_s25 + $0x40] sm:$0xff]  ;;  %v1834_v3 = vld [vmem:[%s3800_s25 + $0x48] sm:$0xff]  ;;  %v1835_v4 = vld [vmem:[%s3800_s25 + $0x50] sm:$0xff] }
 0x249   : > { %1081 = vperm.xlu1 %2780, %v1027_v31   ;;  %v1836_v5 = vld [vmem:[%s3800_s25 + $0x58] sm:$0xff]  ;;  %v1837_v6 = vld [vmem:[%s3800_s25 + $0x60] sm:$0xff]  ;;  %v1838_v7 = vld [vmem:[%s3800_s25 + $0x68] sm:$0xff] }
 0x24a   : > { %v1839_v8 = vld [vmem:[%s3800_s25 + $0x70] sm:$0xff]  ;;  %v1840_v9 = vld [vmem:[%s3800_s25 + $0x78] sm:$0xff]  ;;  %v2203_v11 = vld [vmem:[%s3801_s23] sm:$0x7] }
 0x24b   : > { %2574 = vmatmul.mubr.msk.bf16.vlgmr.msra.gmra.mrb[0].mxu0 %vm1154_vm4, %v2782_v29  ;;  %v2789_v13 = vld [vmem:[%s3802_s15] sm:$0xff]  }
 0x24c   : > { %2577 = vmatprep.mubr.msk.bf16.mxu0 %vm1154_vm4, %v2783_v10  ;;  %1086 = vperm.xlu0 %2779, %v1028_v32  }
 0x24d   : > { %1091 = vperm.xlu1 %2780, %v1029_v33   ;;  %2605 = vmatprep.mubr.bf16.mxu1 %v2789_v13 }
 0x250   : > { %1096 = vperm.xlu0 %2779, %v1030_v35  }
 0x251   : > { %1101 = vperm.xlu1 %2780, %v1031_v37  }
 0x253   : > { %2578 = vmatmul.mubr.msk.bf16.gmra.mrb[4].mxu0 %vm1154_vm4, %v2784_v34 }
 0x254   : > { %2581 = vmatprep.mubr.msk.bf16.mxu0 %vm1154_vm4, %v2785_v36  ;;  %1106 = vperm.xlu0 %2779, %v1032_v38  }
 0x255   : > { %1111 = vperm.xlu1 %2780, %v1033_v39  }
 0x258   : > { %1450 = vperm.xlu0 %2779, %v1432_v41  }
 0x259   : > { %1455 = vperm.xlu1 %2780, %v1433_v43  }
 0x25b   : > { %2582 = vmatmul.mubr.msk.bf16.gmra.mrb[8].mxu0 %vm1154_vm4, %v2786_v40 }
 0x25c   : > { %2585 = vmatprep.mubr.msk.bf16.mxu0 %vm1154_vm4, %v2787_v42  ;;  %1460 = vperm.xlu0 %2779, %v1434_v44  }
 0x25d   : > { %1465 = vperm.xlu1 %2780, %v1435_v45  }
 0x260   : > { %1470 = vperm.xlu0 %2779, %v1436_v12  }
 0x261   : > { %1475 = vperm.xlu1 %2780, %v1437_v47  }
 0x263   : > { %2586 = vmatmul.mubr.msk.bf16.gmra.mrb[12].mxu0 %vm1154_vm4, %v2788_v46 }
 0x264   : > { %1480 = vperm.xlu0 %2779, %v1438_v48  }
 0x265   : > { %1485 = vperm.xlu1 %2780, %v1439_v49  }
 0x268   : > { %1490 = vperm.xlu0 %2779, %v1440_v50  }
 0x269   : > { %1495 = vperm.xlu1 %2780, %v1441_v51  }
 0x26c   : > { %1500 = vperm.xlu0 %2779, %v1442_v52  }
 0x26d   : > { %1505 = vperm.xlu1 %2780, %v1443_v53  }
 0x270   : > { %1510 = vperm.xlu0 %2779, %v1444_v54  }
 0x271   : > { %1515 = vperm.xlu1 %2780, %v1445_v55  }
 0x274   : > { %1520 = vperm.xlu0 %2779, %v1446_v56  }
 0x275   : > { %1525 = vperm.xlu1 %2780, %v1447_v57  }
 0x278   : > { %1843 = vperm.xlu0 %2779, %v1825_v58  }
 0x279   : > { %1848 = vperm.xlu1 %2780, %v1826_v59  }
 0x27c   : > { %1853 = vperm.xlu0 %2779, %v1827_v60  }
 0x27d   : > { %1858 = vperm.xlu1 %2780, %v1828_v61  }
 0x280   : > { %1863 = vperm.xlu0 %2779, %v1829_v62  }
 0x281   : > { %1868 = vperm.xlu1 %2780, %v1830_v63  }
 0x284   : > { %1873 = vperm.xlu0 %2779, %v1831_v0  }
 0x285   : > { %1878 = vperm.xlu1 %2780, %v1832_v1  }
 0x288   : > { %1883 = vperm.xlu0 %2779, %v1833_v2  }
 0x289   : > { %1888 = vperm.xlu1 %2780, %v1834_v3  }
 0x28c   : > { %1893 = vperm.xlu0 %2779, %v1835_v4  }
 0x28d   : > { %1898 = vperm.xlu1 %2780, %v1836_v5  }
 0x290   : > { %1903 = vperm.xlu0 %2779, %v1837_v6  }
 0x291   : > { %1908 = vperm.xlu1 %2780, %v1838_v7  }
 0x294   : > { %1913 = vperm.xlu0 %2779, %v1839_v8  }
 0x295   : > { %1918 = vperm.xlu1 %2780, %v1840_v9  }
 0x298   : > { %2206 = vperm.xlu0 %2779, %v2203_v11  }
 0x2b7   : > { %v1037_v14 = vpop.permute.xlu0 %1036  ;;  %v1047_v15 = vpop.permute.xlu1 %1046 }
 0x2bb   : > { %v1042_v16 = vpop.permute.xlu0 %1041  ;;  %v1052_v17 = vpop.permute.xlu1 %1051 }
 0x2bf   : > { %v1057_v18 = vpop.permute.xlu0 %1056 }
 0x2c0   : > { %v1062_v19 = vpop.permute.xlu1 %1061 }
 0x2c3   : > { %v1067_v20 = vpop.permute.xlu0 %1066 }
 0x2c4   : > { %v1072_v29 = vpop.permute.xlu1 %1071 }
 0x2c7   : > { %v1077_v33 = vpop.permute.xlu0 %1076 }
 0x2c8   : > { %v1082_v43 = vpop.permute.xlu1 %1081 }
 0x2cb   : > { %v1087_v50 = vpop.permute.xlu0 %1086 }
 0x2cc   : > { %v1092_v62 = vpop.permute.xlu1 %1091 }
 0x2cf   : > { %v1097_v5 = vpop.permute.xlu0 %1096 }
 0x31e   : > { %v2575_v21 = vpop.f32.mrb[0].mxu0 }
 0x31f   : > { %v1226_v22 = vadd.f32 %v2575_v21, %v1047_v15  ;;  %v1217_v23 = vpop.f32.mrb[1].mxu0 }
 0x320   : > { %v1218_v24 = vadd.f32 %v1217_v23, %v1037_v14  ;;  %v2576_v25 = vpop.f32.mrb[2].mxu0 }
 0x321   : > { %v1282_v26 = vmul.f32 %v1226_v22, %v1226_v22  ;;  %v3441_v27 = vadd.f32 %v2576_v25, %v1052_v17  ;;  %v1220_v28 = vpop.f32.mrb[3].mxu0  ;;  %v1102_v25 = vpop.permute.xlu1 %1101 }
 0x322   : > { %v1280_v30 = vmul.f32 %v1218_v24, %v1218_v24  ;;  %v3443_v10 = vadd.f32 %v1220_v28, %v1042_v16  ;;  %v3465_v16 = vmul.f32 0.5, %v1226_v22  ;;  %v1296_v17 = vmul.f32 0.5, %v1218_v24 }
 0x323   : > { %v1314_v31 = vmul.f32 0.035677407, %v1282_v26  ;;  %v1283_v32 = vmul.f32 %v3441_v27, %v3441_v27  ;;  %v3474_v26 = vmul.f32 0.5, %v3441_v27 }
 0x324   : > { %v1312_v34 = vmul.f32 0.035677407, %v1280_v30  ;;  %v1281_v35 = vmul.f32 %v3443_v10, %v3443_v10 }
 0x325   : > { %v1330_v36 = vadd.f32 0.7978846, %v1314_v31  ;;  %v1315_v37 = vmul.f32 0.035677407, %v1283_v32 }
 0x326   : > { %v1328_v38 = vadd.f32 0.7978846, %v1312_v34  ;;  %v1313_v39 = vmul.f32 0.035677407, %v1281_v35  ;;  %v2579_v40 = vpop.f32.mrb[4].mxu0 }
 0x327   : > { %v1242_v41 = vadd.f32 %v2579_v40, %v1067_v20  ;;  %v1233_v42 = vpop.f32.mrb[5].mxu0  ;;  %v1331_v47 = vadd.f32 0.7978846, %v1315_v37  ;;  %v1346_v51 = vmul.f32 %v1330_v36, %v1226_v22 }
 0x328   : > { %v1344_v44 = vmul.f32 %v1328_v38, %v1218_v24  ;;  %v1329_v45 = vadd.f32 0.7978846, %v1313_v39  ;;  %v1234_v46 = vadd.f32 %v1233_v42, %v1057_v18  ;;  %v2580_v12 = vpop.f32.mrb[6].mxu0 }
 0x329   : > { %v1286_v48 = vmul.f32 %v1242_v41, %v1242_v41  ;;  %v1236_v49 = vpop.f32.mrb[7].mxu0  ;;  %v3450_v55 = vadd.f32 %v2580_v12, %v1072_v29  ;;  %v1347_v58 = vmul.f32 %v1331_v47, %v3441_v27  ;;  %v1297_v29 = vmul.f32 0.5, %v3443_v10 }
 0x32a   : > { %v1345_v52 = vmul.f32 %v1329_v45, %v3443_v10  ;;  %v1284_v53 = vmul.f32 %v1234_v46, %v1234_v46  ;;  %2805 = vtanh.f32 %v1344_v44  ;;  %v3452_v56 = vadd.f32 %v1236_v49, %v1062_v19 }
 0x32b   : > { %v1318_v54 = vmul.f32 0.035677407, %v1286_v48  ;;  %v1287_v60 = vmul.f32 %v3450_v55, %v3450_v55  ;;  %v3481_v34 = vmul.f32 0.5, %v1242_v41  ;;  %v1300_v37 = vmul.f32 0.5, %v1234_v46 }
 0x32c   : > { %2807 = vtanh.f32 %v1345_v52  ;;  %v1316_v57 = vmul.f32 0.035677407, %v1284_v53  ;;  %v1285_v61 = vmul.f32 %v3452_v56, %v3452_v56 }
 0x32d   : > { %v1334_v59 = vadd.f32 0.7978846, %v1318_v54  ;;  %2809 = vtanh.f32 %v1346_v51  ;;  %v1319_v1 = vmul.f32 0.035677407, %v1287_v60  ;;  %v1303_v51 = vmul.f32 0.5, %v3450_v55 }
 0x32e   : > { %v1332_v63 = vadd.f32 0.7978846, %v1316_v57  ;;  %v2583_v0 = vpop.f32.mrb[8].mxu0  ;;  %v1317_v2 = vmul.f32 0.035677407, %v1285_v61  ;;  %2811 = vtanh.f32 %v1347_v58 }
 0x32f   : > { %v3459_v3 = vadd.f32 %v2583_v0, %v1087_v50  ;;  %v1249_v4 = vpop.f32.mrb[9].mxu0  ;;  %v1350_v6 = vmul.f32 %v1334_v59, %v1242_v41  ;;  %v1335_v11 = vadd.f32 0.7978846, %v1319_v1  ;;  %v1112_v50 = vpop.permute.xlu1 %1111 }
 0x330   : > { %v1348_v7 = vmul.f32 %v1332_v63, %v1234_v46  ;;  %v3461_v8 = vadd.f32 %v1249_v4, %v1077_v33  ;;  %v2584_v9 = vpop.f32.mrb[10].mxu0  ;;  %v1333_v13 = vadd.f32 0.7978846, %v1317_v2  ;;  %v1107_v33 = vpop.permute.xlu0 %1106 }
 0x331   : > { %v1290_v14 = vmul.f32 %v3459_v3, %v3459_v3  ;;  %v1252_v15 = vpop.f32.mrb[11].mxu0  ;;  %v1351_v19 = vmul.f32 %v1335_v11, %v3450_v55  ;;  %v3471_v23 = vadd.f32 %v2584_v9, %v1092_v62 }
 0x332   : > { %2813 = vtanh.f32 %v1348_v7  ;;  %v1288_v18 = vmul.f32 %v3461_v8, %v3461_v8  ;;  %v1349_v20 = vmul.f32 %v1333_v13, %v3452_v56  ;;  %v3476_v22 = vadd.f32 %v1252_v15, %v1082_v43 }
 0x333   : > { %v1322_v21 = vmul.f32 0.035677407, %v1290_v14  ;;  %2815 = vtanh.f32 %v1350_v6  ;;  %v1291_v31 = vmul.f32 %v3471_v23, %v3471_v23  ;;  %v1301_v6 = vmul.f32 0.5, %v3452_v56 }
 0x334   : > { %v1320_v28 = vmul.f32 0.035677407, %v1288_v18  ;;  %v2806_v24 = vpop.eup %2805  ;;  %2817 = vtanh.f32 %v1351_v19  ;;  %v1289_v27 = vmul.f32 %v3476_v22, %v3476_v22 }
 0x335   : > { %v1338_v30 = vadd.f32 0.7978846, %v1322_v21  ;;  %2819 = vtanh.f32 %v1349_v20  ;;  %v1323_v39 = vmul.f32 0.035677407, %v1291_v31  ;;  %v1376_v49 = vadd.f32 1.0, %v2806_v24 }
 0x336   : > { %v2808_v32 = vpop.eup %2807  ;;  %v1336_v35 = vadd.f32 0.7978846, %v1320_v28  ;;  %v2587_v36 = vpop.f32.mrb[12].mxu0  ;;  %v1321_v43 = vmul.f32 0.035677407, %v1289_v27 }
 0x337   : > { %v1354_v38 = vmul.f32 %v1338_v30, %v3459_v3  ;;  %v3486_v10 = vadd.f32 %v2587_v36, %v1107_v33  ;;  %v1265_v40 = vpop.f32.mrb[13].mxu0  ;;  %v1377_v45 = vadd.f32 1.0, %v2808_v32  ;;  %v2810_v12 = vpop.eup %2809  ;;  %v1339_v47 = vadd.f32 0.7978846, %v1323_v39 }
 0x338   : > { %v1352_v42 = vmul.f32 %v1336_v35, %v3461_v8  ;;  %v3489_v44 = vadd.f32 %v1265_v40, %v1097_v5  ;;  %v2588_v41 = vpop.f32.mrb[14].mxu0  ;;  %v1337_v52 = vadd.f32 0.7978846, %v1321_v43  ;;  %v2812_v54 = vpop.eup %2811  ;;  %v1378_v1 = vadd.f32 1.0, %v2810_v12 }
 0x339   : > { %2821 = vtanh.f32 %v1354_v38  ;;  %v1294_v48 = vmul.f32 %v3486_v10, %v3486_v10  ;;  %v1268_v46 = vpop.f32.mrb[15].mxu0  ;;  %v1355_v57 = vmul.f32 %v1339_v47, %v3471_v23  ;;  %v3497_v59 = vadd.f32 %v2588_v41, %v1112_v50 }
 0x33a   : > { %2823 = vtanh.f32 %v1352_v42  ;;  %v1292_v53 = vmul.f32 %v3489_v44, %v3489_v44  ;;  %v3499_v60 = vadd.f32 %v1268_v46, %v1102_v25  ;;  %v1353_v62 = vmul.f32 %v1337_v52, %v3476_v22 }
 0x33b   : > { %v1326_v58 = vmul.f32 0.035677407, %v1294_v48  ;;  %v1393_v0 = vmul.f32 %v1377_v45, %v1297_v29  ;;  %2825 = vtanh.f32 %v1355_v57  ;;  %v1295_v2 = vmul.f32 %v3497_v59, %v3497_v59 }
 0x33c   : > { %v2814_v61 = vpop.eup %2813  ;;  %v1324_v63 = vmul.f32 0.035677407, %v1292_v53  ;;  %v1392_v4 = vmul.f32 %v1376_v49, %v1296_v17  ;;  %2827 = vtanh.f32 %v1353_v62  ;;  %v1293_v9 = vmul.f32 %v3499_v60, %v3499_v60 }
 0x33d   : > { %v1342_v55 = vadd.f32 0.7978846, %v1326_v58  ;;  %v2816_v5 = vpop.eup %2815  ;;  %v1327_v14 = vmul.f32 0.035677407, %v1295_v2  ;;  %v1379_v18 = vadd.f32 1.0, %v2812_v54  ;;  %v1394_v17 = vmul.f32 %v1378_v1, %v3465_v16 }
 0x33e   : > { %v1340_v7 = vadd.f32 0.7978846, %v1324_v63  ;;  %v2818_v11 = vpop.eup %2817  ;;  %v1408_v15 = vpack.c.bf16 %v1393_v0, %v1392_v4  ;;  %v1325_v21 = vmul.f32 0.035677407, %v1293_v9  ;;  %v1380_v25 = vadd.f32 1.0, %v2814_v61 }
 0x33f   : > { %v1358_v13 = vmul.f32 %v1342_v55, %v3486_v10  ;;  %v2820_v19 = vpop.eup %2819  ;;  %v1343_v56 = vadd.f32 0.7978846, %v1327_v14  ;;  %v1395_v28 = vmul.f32 %v1379_v18, %v3474_v26  ;;  %v1382_v31 = vadd.f32 1.0, %v2816_v5  ;;  %v2795_v14 = vld [vmem:[%s3803_s27 + $0x30] sm:$0xff]   ;;  %v2797_v18 = vld [vmem:[%s3804_s22] sm:$0xff]  }
 0x340   : > { %v1356_v20 = vmul.f32 %v1340_v7, %v3489_v44  ;;  %2589 = vmatprep.subr.bf16.mxu1 %v1408_v15  ;;  %v1381_v24 = vadd.f32 1.0, %v2820_v19  ;;  %v1341_v29 = vadd.f32 0.7978846, %v1325_v21  ;;  %v1396_v30 = vmul.f32 %v1380_v25, %v1300_v37  ;;  %2637 = vmatprep.mubr.bf16.mxu0 %v2797_v18  ;;  %v1451_v19 = vpop.permute.xlu0 %1450 }
 0x341   : > { %2829 = vtanh.f32 %v1358_v13  ;;  %2590 = vmatpush3.bf16.msra.mxu1 %v1408_v15  ;;  %v1359_v33 = vmul.f32 %v1343_v56, %v3497_v59  ;;  %v1409_v35 = vpack.c.bf16 %v1395_v28, %v1394_v17  ;;  %v1383_v36 = vadd.f32 1.0, %v2818_v11  ;;  %v2794_v13 = vld [vmem:[%s3803_s27 + $0x28] sm:$0xff]   ;;  %v2796_v15 = vld [vmem:[%s3803_s27 + $0x38] sm:$0xff]  }
 0x342   : > { %2831 = vtanh.f32 %v1356_v20  ;;  %v1397_v27 = vmul.f32 %v1381_v24, %v1301_v6  ;;  %v1357_v16 = vmul.f32 %v1341_v29, %v3499_v60  ;;  %v1398_v26 = vmul.f32 %v1382_v31, %v3481_v34  ;;  %v1456_v20 = vpop.permute.xlu1 %1455 }
 0x343   : > { %v2822_v32 = vpop.eup %2821  ;;  %2833 = vtanh.f32 %v1359_v33  ;;  %2591 = vmatprep.subr.bf16.mxu1 %v1409_v35  ;;  %v1399_v40 = vmul.f32 %v1383_v36, %v1303_v51  ;;  %v1306_v12 = vmul.f32 0.5, %v3459_v3  ;;  %v1307_v47 = vmul.f32 0.5, %v3471_v23 }
 0x344   : > { %v2824_v38 = vpop.eup %2823  ;;  %v1410_v39 = vpack.c.bf16 %v1397_v27, %v1396_v30  ;;  %2835 = vtanh.f32 %v1357_v16  ;;  %v1386_v42 = vadd.f32 1.0, %v2822_v32  ;;  %v1304_v46 = vmul.f32 0.5, %v3461_v8  ;;  %v1461_v21 = vpop.permute.xlu0 %1460 }
 0x345   : > { %2592 = vmatpush3.bf16.msra.mxu1 %v1409_v35  ;;  %v2826_v37 = vpop.eup %2825  ;;  %v1411_v43 = vpack.c.bf16 %v1399_v40, %v1398_v26  ;;  %v1384_v41 = vadd.f32 1.0, %v2824_v38  ;;  %v1305_v49 = vmul.f32 0.5, %v3476_v22  ;;  %v1310_v8 = vmul.f32 0.5, %v3486_v10  ;;  %v2790_v10 = vld [vmem:[%s3803_s27 + $0x8] sm:$0xff]  }
 0x346   : > { %2593 = vmatprep.subr.bf16.mxu1 %v1410_v39  ;;  %v2828_v45 = vpop.eup %2827  ;;  %v1387_v48 = vadd.f32 1.0, %v2826_v37  ;;  %v1402_v34 = vmul.f32 %v1386_v42, %v1306_v12  ;;  %v1311_v22 = vmul.f32 0.5, %v3497_v59  ;;  %v1308_v1 = vmul.f32 0.5, %v3489_v44  ;;  %v2791_v44 = vld [vmem:[%s3803_s27 + $0x10] sm:$0xff]   ;;  %v2792_v59 = vld [vmem:[%s3803_s27 + $0x18] sm:$0xff]   ;;  %v1466_v17 = vpop.permute.xlu1 %1465 }
 0x347   : > { %v1385_v50 = vadd.f32 1.0, %v2828_v45  ;;  %v1400_v53 = vmul.f32 %v1384_v41, %v1304_v46  ;;  %v1309_v55 = vmul.f32 0.5, %v3499_v60  ;;  %v2793_v60 = vld [vmem:[%s3803_s27 + $0x20] sm:$0xff]  }
 0x348   : > { %v1403_v51 = vmul.f32 %v1387_v48, %v1307_v47  ;;  %v1471_v25 = vpop.permute.xlu0 %1470 }
 0x349   : > { %2594 = vmatpush3.bf16.msra.mxu1 %v1410_v39  ;;  %v1401_v54 = vmul.f32 %v1385_v50, %v1305_v49 }
 0x34a   : > { %2595 = vmatprep.subr.bf16.mxu1 %v1411_v43  ;;  %v1413_v58 = vpack.c.bf16 %v1403_v51, %v1402_v34  ;;  %v1476_v56 = vpop.permute.xlu1 %1475 }
 0x34b   : > { %v2830_v52 = vpop.eup %2829  ;;  %v1412_v61 = vpack.c.bf16 %v1401_v54, %v1400_v53 }
 0x34c   : > { %v2832_v57 = vpop.eup %2831  ;;  %v1390_v3 = vadd.f32 1.0, %v2830_v52  ;;  %v1481_v28 = vpop.permute.xlu0 %1480 }
 0x34d   : > { %2596 = vmatpush3.bf16.msra.mxu1 %v1411_v43  ;;  %v2834_v62 = vpop.eup %2833  ;;  %v1388_v23 = vadd.f32 1.0, %v2832_v57 }
 0x34e   : > { %2597 = vmatprep.subr.bf16.mxu1 %v1412_v61  ;;  %v2836_v63 = vpop.eup %2835  ;;  %v1391_v0 = vadd.f32 1.0, %v2834_v62  ;;  %v1406_v4 = vmul.f32 %v1390_v3, %v1310_v8  ;;  %v1486_v36 = vpop.permute.xlu1 %1485 }
 0x34f   : > { %v1389_v2 = vadd.f32 1.0, %v2836_v63  ;;  %v1404_v6 = vmul.f32 %v1388_v23, %v1308_v1 }
 0x350   : > { %v1407_v5 = vmul.f32 %v1391_v0, %v1311_v22  ;;  %v1491_v40 = vpop.permute.xlu0 %1490 }
 0x351   : > { %2598 = vmatpush3.bf16.msra.mxu1 %v1412_v61  ;;  %v1405_v7 = vmul.f32 %v1389_v2, %v1309_v55 }
 0x352   : > { %2599 = vmatprep.subr.bf16.mxu1 %v1413_v58  ;;  %v1415_v9 = vpack.c.bf16 %v1407_v5, %v1406_v4  ;;  %v1496_v49 = vpop.permute.xlu1 %1495 }
 0x353   : > { %v1414_v11 = vpack.c.bf16 %v1405_v7, %v1404_v6 }
 0x355   : > { %2600 = vmatpush3.bf16.msra.mxu1 %v1413_v58  ;;  %v1501_v58 = vpop.permute.xlu0 %1500 }
 0x356   : > { %2601 = vmatprep.subr.bf16.mxu1 %v1414_v11  ;;  %v1506_v4 = vpop.permute.xlu1 %1505 }
 0x359   : > { %2602 = vmatpush3.bf16.msra.mxu1 %v1414_v11 }
 0x35a   : > { %2603 = vmatprep.subr.bf16.mxu1 %v1415_v9 }
 0x35d   : > { %2604 = vmatpush3.bf16.msra.mxu1 %v1415_v9 }
 0x360   : > { %2606 = vmatmul.mubr.bf16.vlgmr.msra.gmra.mrb[0].mxu1 %v2790_v10 }
 0x361   : > { %2609 = vmatprep.mubr.bf16.mxu1 %v2791_v44  ;;  %v1511_v44 = vpop.permute.xlu0 %1510 }
 0x368   : > { %2610 = vmatmul.mubr.bf16.gmra.mrb[4].mxu1 %v2792_v59 }
 0x369   : > { %2613 = vmatprep.mubr.bf16.mxu1 %v2793_v60 }
 0x370   : > { %2614 = vmatmul.mubr.bf16.gmra.mrb[8].mxu1 %v2794_v13 }
 0x371   : > { %2617 = vmatprep.mubr.bf16.mxu1 %v2795_v14 }
 0x378   : > { %2618 = vmatmul.mubr.bf16.gmra.mrb[12].mxu1 %v2796_v15 }
 0x433   : > { %v2607_v24 = vpop.f32.mrb[0].mxu1 }
 0x434   : > { %v1619_v29 = vadd.f32 %v2607_v24, %v1461_v21  ;;  %v1610_v30 = vpop.f32.mrb[1].mxu1 }
 0x435   : > { %v1611_v31 = vadd.f32 %v1610_v30, %v1451_v19  ;;  %v2608_v32 = vpop.f32.mrb[2].mxu1 }
 0x436   : > { %v1675_v33 = vmul.f32 %v1619_v29, %v1619_v29  ;;  %v3546_v35 = vadd.f32 %v2608_v32, %v1466_v17  ;;  %v1613_v27 = vpop.f32.mrb[3].mxu1  ;;  %v3570_v21 = vmul.f32 0.5, %v1619_v29  ;;  %v1516_v32 = vpop.permute.xlu1 %1515 }
 0x437   : > { %v1673_v38 = vmul.f32 %v1611_v31, %v1611_v31  ;;  %v3548_v16 = vadd.f32 %v1613_v27, %v1456_v20  ;;  %v1689_v17 = vmul.f32 0.5, %v1611_v31 }
 0x438   : > { %v1707_v39 = vmul.f32 0.035677407, %v1675_v33  ;;  %v1676_v26 = vmul.f32 %v3546_v35, %v3546_v35  ;;  %v3579_v33 = vmul.f32 0.5, %v3546_v35 }
 0x439   : > { %v1705_v42 = vmul.f32 0.035677407, %v1673_v38  ;;  %v1674_v37 = vmul.f32 %v3548_v16, %v3548_v16 }
 0x43a   : > { %v1723_v43 = vadd.f32 0.7978846, %v1707_v39  ;;  %v1708_v41 = vmul.f32 0.035677407, %v1676_v26 }
 0x43b   : > { %v1721_v45 = vadd.f32 0.7978846, %v1705_v42  ;;  %v1706_v12 = vmul.f32 0.035677407, %v1674_v37  ;;  %v2611_v47 = vpop.f32.mrb[4].mxu1 }
 0x43c   : > { %v1635_v48 = vadd.f32 %v2611_v47, %v1481_v28  ;;  %v1626_v46 = vpop.f32.mrb[5].mxu1  ;;  %v1724_v53 = vadd.f32 0.7978846, %v1708_v41  ;;  %v1739_v61 = vmul.f32 %v1723_v43, %v1619_v29 }
 0x43d   : > { %v1737_v50 = vmul.f32 %v1721_v45, %v1611_v31  ;;  %v1722_v34 = vadd.f32 0.7978846, %v1706_v12  ;;  %v1627_v51 = vadd.f32 %v1626_v46, %v1471_v25  ;;  %v2612_v52 = vpop.f32.mrb[6].mxu1 }
 0x43e   : > { %v1679_v54 = vmul.f32 %v1635_v48, %v1635_v48  ;;  %v1629_v57 = vpop.f32.mrb[7].mxu1  ;;  %v3555_v63 = vadd.f32 %v2612_v52, %v1486_v36  ;;  %v1740_v0 = vmul.f32 %v1724_v53, %v3546_v35  ;;  %v1690_v36 = vmul.f32 0.5, %v3548_v16 }
 0x43f   : > { %v1738_v3 = vmul.f32 %v1722_v34, %v3548_v16  ;;  %v1677_v62 = vmul.f32 %v1627_v51, %v1627_v51  ;;  %2837 = vtanh.f32 %v1737_v50  ;;  %v3557_v8 = vadd.f32 %v1629_v57, %v1476_v56 }
 0x440   : > { %v1711_v23 = vmul.f32 0.035677407, %v1679_v54  ;;  %v1680_v55 = vmul.f32 %v3555_v63, %v3555_v63  ;;  %v3586_v42 = vmul.f32 0.5, %v1635_v48  ;;  %v1693_v41 = vmul.f32 0.5, %v1627_v51 }
 0x441   : > { %2839 = vtanh.f32 %v1738_v3  ;;  %v1709_v22 = vmul.f32 0.035677407, %v1677_v62  ;;  %v1678_v2 = vmul.f32 %v3557_v8, %v3557_v8 }
 0x442   : > { %v1727_v1 = vadd.f32 0.7978846, %v1711_v23  ;;  %2841 = vtanh.f32 %v1739_v61  ;;  %v1712_v7 = vmul.f32 0.035677407, %v1680_v55  ;;  %v1696_v61 = vmul.f32 0.5, %v3555_v63 }
 0x443   : > { %v1725_v5 = vadd.f32 0.7978846, %v1709_v22  ;;  %v2615_v6 = vpop.f32.mrb[8].mxu1  ;;  %v1710_v9 = vmul.f32 0.035677407, %v1678_v2  ;;  %2843 = vtanh.f32 %v1740_v0 }
 0x444   : > { %v3564_v11 = vadd.f32 %v2615_v6, %v1501_v58  ;;  %v1642_v10 = vpop.f32.mrb[9].mxu1  ;;  %v1743_v59 = vmul.f32 %v1727_v1, %v1635_v48  ;;  %v1728_v15 = vadd.f32 0.7978846, %v1712_v7  ;;  %v1526_v58 = vpop.permute.xlu1 %1525 }
 0x445   : > { %v1741_v60 = vmul.f32 %v1725_v5, %v1627_v51  ;;  %v3566_v13 = vadd.f32 %v1642_v10, %v1491_v40  ;;  %v2616_v14 = vpop.f32.mrb[10].mxu1  ;;  %v1726_v18 = vadd.f32 0.7978846, %v1710_v9  ;;  %v1521_v40 = vpop.permute.xlu0 %1520 }
 0x446   : > { %v1683_v19 = vmul.f32 %v3564_v11, %v3564_v11  ;;  %v1645_v20 = vpop.f32.mrb[11].mxu1  ;;  %v1744_v56 = vmul.f32 %v1728_v15, %v3555_v63  ;;  %v3576_v30 = vadd.f32 %v2616_v14, %v1506_v4 }
 0x447   : > { %2845 = vtanh.f32 %v1741_v60  ;;  %v1681_v25 = vmul.f32 %v3566_v13, %v3566_v13  ;;  %v1742_v28 = vmul.f32 %v1726_v18, %v3557_v8  ;;  %v3581_v29 = vadd.f32 %v1645_v20, %v1496_v49 }
 0x448   : > { %v1715_v24 = vmul.f32 0.035677407, %v1683_v19  ;;  %2847 = vtanh.f32 %v1743_v59  ;;  %v1684_v39 = vmul.f32 %v3576_v30, %v3576_v30  ;;  %v1694_v59 = vmul.f32 0.5, %v3557_v8 }
 0x449   : > { %v1713_v27 = vmul.f32 0.035677407, %v1681_v25  ;;  %v2838_v31 = vpop.eup %2837  ;;  %2849 = vtanh.f32 %v1744_v56  ;;  %v1682_v35 = vmul.f32 %v3581_v29, %v3581_v29 }
 0x44a   : > { %v1731_v38 = vadd.f32 0.7978846, %v1715_v24  ;;  %2851 = vtanh.f32 %v1742_v28  ;;  %v1716_v12 = vmul.f32 0.035677407, %v1684_v39  ;;  %v1769_v57 = vadd.f32 1.0, %v2838_v31 }
 0x44b   : > { %v2840_v26 = vpop.eup %2839  ;;  %v1729_v37 = vadd.f32 0.7978846, %v1713_v27  ;;  %v2619_v43 = vpop.f32.mrb[12].mxu1  ;;  %v1714_v49 = vmul.f32 0.035677407, %v1682_v35 }
 0x44c   : > { %v1747_v45 = vmul.f32 %v1731_v38, %v3564_v11  ;;  %v3591_v16 = vadd.f32 %v2619_v43, %v1521_v40  ;;  %v1658_v47 = vpop.f32.mrb[13].mxu1  ;;  %v1770_v34 = vadd.f32 1.0, %v2840_v26  ;;  %v2842_v52 = vpop.eup %2841  ;;  %v1732_v53 = vadd.f32 0.7978846, %v1716_v12 }
 0x44d   : > { %v1745_v46 = vmul.f32 %v1729_v37, %v3566_v13  ;;  %v3594_v50 = vadd.f32 %v1658_v47, %v1511_v44  ;;  %v2620_v48 = vpop.f32.mrb[14].mxu1  ;;  %v1730_v3 = vadd.f32 0.7978846, %v1714_v49  ;;  %v2844_v23 = vpop.eup %2843  ;;  %v1771_v7 = vadd.f32 1.0, %v2842_v52 }
 0x44e   : > { %2853 = vtanh.f32 %v1747_v45  ;;  %v1687_v54 = vmul.f32 %v3591_v16, %v3591_v16  ;;  %v1661_v51 = vpop.f32.mrb[15].mxu1  ;;  %v1748_v22 = vmul.f32 %v1732_v53, %v3576_v30  ;;  %v3602_v1 = vadd.f32 %v2620_v48, %v1526_v58 }
 0x44f   : > { %2855 = vtanh.f32 %v1745_v46  ;;  %v1685_v62 = vmul.f32 %v3594_v50, %v3594_v50  ;;  %v3604_v55 = vadd.f32 %v1661_v51, %v1516_v32  ;;  %v1746_v4 = vmul.f32 %v1730_v3, %v3581_v29 }
 0x450   : > { %v1719_v0 = vmul.f32 0.035677407, %v1687_v54  ;;  %v1786_v6 = vmul.f32 %v1770_v34, %v1690_v36  ;;  %2857 = vtanh.f32 %v1748_v22  ;;  %v1688_v9 = vmul.f32 %v3602_v1, %v3602_v1 }
 0x451   : > { %v2846_v2 = vpop.eup %2845  ;;  %v1717_v5 = vmul.f32 0.035677407, %v1685_v62  ;;  %v1785_v10 = vmul.f32 %v1769_v57, %v1689_v17  ;;  %2859 = vtanh.f32 %v1746_v4  ;;  %v1686_v14 = vmul.f32 %v3604_v55, %v3604_v55 }
 0x452   : > { %v1735_v63 = vadd.f32 0.7978846, %v1719_v0  ;;  %v2848_v44 = vpop.eup %2847  ;;  %v1720_v19 = vmul.f32 0.035677407, %v1688_v9  ;;  %v1772_v25 = vadd.f32 1.0, %v2844_v23  ;;  %v1787_v17 = vmul.f32 %v1771_v7, %v3570_v21 }
 0x453   : > { %v1733_v60 = vadd.f32 0.7978846, %v1717_v5  ;;  %v2850_v15 = vpop.eup %2849  ;;  %v1801_v20 = vpack.c.bf16 %v1786_v6, %v1785_v10  ;;  %v1718_v24 = vmul.f32 0.035677407, %v1686_v14  ;;  %v1773_v32 = vadd.f32 1.0, %v2846_v2 }
 0x454   : > { %v1751_v18 = vmul.f32 %v1735_v63, %v3591_v16  ;;  %v2852_v56 = vpop.eup %2851  ;;  %v1736_v8 = vadd.f32 0.7978846, %v1720_v19  ;;  %v1788_v27 = vmul.f32 %v1772_v25, %v3579_v33  ;;  %v1775_v39 = vadd.f32 1.0, %v2848_v44  ;;  %v2803_v19 = vld [vmem:[%s3804_s22 + $0x30] sm:$0xff]  }
 0x455   : > { %v1749_v28 = vmul.f32 %v1733_v60, %v3594_v50  ;;  %2621 = vmatprep.subr.bf16.mxu0 %v1801_v20  ;;  %v1774_v31 = vadd.f32 1.0, %v2852_v56  ;;  %v1734_v36 = vadd.f32 0.7978846, %v1718_v24  ;;  %v1789_v38 = vmul.f32 %v1773_v32, %v1693_v41  ;;  %v1844_v56 = vpop.permute.xlu0 %1843 }
 0x456   : > { %2861 = vtanh.f32 %v1751_v18  ;;  %2622 = vmatpush3.bf16.msra.mxu0 %v1801_v20  ;;  %v1752_v40 = vmul.f32 %v1736_v8, %v3602_v1  ;;  %v1802_v37 = vpack.c.bf16 %v1788_v27, %v1787_v17  ;;  %v1776_v43 = vadd.f32 1.0, %v2850_v15  ;;  %v2802_v18 = vld [vmem:[%s3804_s22 + $0x28] sm:$0xff]   ;;  %v2804_v20 = vld [vmem:[%s3804_s22 + $0x38] sm:$0xff]  }
 0x457   : > { %2863 = vtanh.f32 %v1749_v28  ;;  %v1790_v35 = vmul.f32 %v1774_v31, %v1694_v59  ;;  %v1750_v21 = vmul.f32 %v1734_v36, %v3604_v55  ;;  %v1791_v33 = vmul.f32 %v1775_v39, %v3586_v42  ;;  %v1849_v28 = vpop.permute.xlu1 %1848 }
 0x458   : > { %v2854_v26 = vpop.eup %2853  ;;  %2865 = vtanh.f32 %v1752_v40  ;;  %2623 = vmatprep.subr.bf16.mxu0 %v1802_v37  ;;  %v1792_v47 = vmul.f32 %v1776_v43, %v1696_v61  ;;  %v1699_v52 = vmul.f32 0.5, %v3564_v11  ;;  %v1700_v53 = vmul.f32 0.5, %v3576_v30 }
 0x459   : > { %v2856_v45 = vpop.eup %2855  ;;  %v1803_v12 = vpack.c.bf16 %v1790_v35, %v1789_v38  ;;  %2867 = vtanh.f32 %v1750_v21  ;;  %v1779_v46 = vadd.f32 1.0, %v2854_v26  ;;  %v1697_v51 = vmul.f32 0.5, %v3566_v13  ;;  %v1854_v24 = vpop.permute.xlu0 %1853 }
 0x45a   : > { %2624 = vmatpush3.bf16.msra.mxu0 %v1802_v37  ;;  %v2858_v41 = vpop.eup %2857  ;;  %v1804_v49 = vpack.c.bf16 %v1792_v47, %v1791_v33  ;;  %v1777_v48 = vadd.f32 1.0, %v2856_v45  ;;  %v1698_v57 = vmul.f32 0.5, %v3581_v29  ;;  %v1703_v13 = vmul.f32 0.5, %v3591_v16  ;;  %v2798_v16 = vld [vmem:[%s3804_s22 + $0x8] sm:$0xff]  }
 0x45b   : > { %2625 = vmatprep.subr.bf16.mxu0 %v1803_v12  ;;  %v2860_v34 = vpop.eup %2859  ;;  %v1780_v54 = vadd.f32 1.0, %v2858_v41  ;;  %v1795_v42 = vmul.f32 %v1779_v46, %v1699_v52  ;;  %v1704_v29 = vmul.f32 0.5, %v3602_v1  ;;  %v1701_v7 = vmul.f32 0.5, %v3594_v50  ;;  %v2799_v50 = vld [vmem:[%s3804_s22 + $0x10] sm:$0xff]   ;;  %v2800_v1 = vld [vmem:[%s3804_s22 + $0x18] sm:$0xff]   ;;  %v1859_v17 = vpop.permute.xlu1 %1858 }
 0x45c   : > { %v1778_v58 = vadd.f32 1.0, %v2860_v34  ;;  %v1793_v62 = vmul.f32 %v1777_v48, %v1697_v51  ;;  %v1702_v63 = vmul.f32 0.5, %v3604_v55  ;;  %v2801_v55 = vld [vmem:[%s3804_s22 + $0x20] sm:$0xff]   ;;  %v2978_v25 = vmov 0.0  }
 0x45d   : > { %v1796_v61 = vmul.f32 %v1780_v54, %v1700_v53  ;;  %2653 = vmatprep.subr.bf16.mxu1 %v2978_v25  ;;  %2669 = vmatprep.mubr.msk.bf16.mxu1 %vm2979_vm6, %v2978_v25  ;;  %v1864_v32 = vpop.permute.xlu0 %1863 }
 0x45e   : > { %2626 = vmatpush3.bf16.msra.mxu0 %v1803_v12  ;;  %v1794_v23 = vmul.f32 %v1778_v58, %v1698_v57 }
 0x45f   : > { %2627 = vmatprep.subr.bf16.mxu0 %v1804_v49  ;;  %v1806_v0 = vpack.c.bf16 %v1796_v61, %v1795_v42  ;;  %v1869_v8 = vpop.permute.xlu1 %1868 }
 0x460   : > { %v2862_v3 = vpop.eup %2861  ;;  %v1805_v2 = vpack.c.bf16 %v1794_v23, %v1793_v62 }
 0x461   : > { %v2864_v22 = vpop.eup %2863  ;;  %v1783_v11 = vadd.f32 1.0, %v2862_v3  ;;  %v1874_v38 = vpop.permute.xlu0 %1873 }
 0x462   : > { %2628 = vmatpush3.bf16.msra.mxu0 %v1804_v49  ;;  %v2866_v4 = vpop.eup %2865  ;;  %v1781_v30 = vadd.f32 1.0, %v2864_v22 }
 0x463   : > { %2629 = vmatprep.subr.bf16.mxu0 %v1805_v2  ;;  %v2868_v5 = vpop.eup %2867  ;;  %v1784_v6 = vadd.f32 1.0, %v2866_v4  ;;  %v1799_v10 = vmul.f32 %v1783_v11, %v1703_v13  ;;  %v1879_v43 = vpop.permute.xlu1 %1878 }
 0x464   : > { %v1782_v9 = vadd.f32 1.0, %v2868_v5  ;;  %v1797_v59 = vmul.f32 %v1781_v30, %v1701_v7 }
 0x465   : > { %v1800_v44 = vmul.f32 %v1784_v6, %v1704_v29  ;;  %v1884_v48 = vpop.permute.xlu0 %1883 }
 0x466   : > { %2630 = vmatpush3.bf16.msra.mxu0 %v1805_v2  ;;  %v1798_v60 = vmul.f32 %v1782_v9, %v1702_v63 }
 0x467   : > { %2631 = vmatprep.subr.bf16.mxu0 %v1806_v0  ;;  %v1808_v14 = vpack.c.bf16 %v1800_v44, %v1799_v10  ;;  %v1889_v42 = vpop.permute.xlu1 %1888 }
 0x468   : > { %v1807_v15 = vpack.c.bf16 %v1798_v60, %v1797_v59 }
 0x469   : > { %v1894_v29 = vpop.permute.xlu0 %1893 }
 0x46a   : > { %2632 = vmatpush3.bf16.msra.mxu0 %v1806_v0 }
 0x46b   : > { %2633 = vmatprep.subr.bf16.mxu0 %v1807_v15  ;;  %v1899_v10 = vpop.permute.xlu1 %1898 }
 0x46e   : > { %2634 = vmatpush3.bf16.msra.mxu0 %v1807_v15 }
 0x46f   : > { %2635 = vmatprep.subr.bf16.mxu0 %v1808_v14 }
 0x472   : > { %2636 = vmatpush3.bf16.msra.mxu0 %v1808_v14 }
 0x475   : > { %2638 = vmatmul.mubr.bf16.vlgmr.msra.gmra.mrb[16].mxu0 %v2798_v16 }
 0x476   : > { %2641 = vmatprep.mubr.bf16.mxu0 %v2799_v50 }
 0x47d   : > { %2642 = vmatmul.mubr.bf16.gmra.mrb[20].mxu0 %v2800_v1 }
 0x47e   : > { %2645 = vmatprep.mubr.bf16.mxu0 %v2801_v55 }
 0x485   : > { %2646 = vmatmul.mubr.bf16.gmra.mrb[24].mxu0 %v2802_v18 }
 0x486   : > { %2649 = vmatprep.mubr.bf16.mxu0 %v2803_v19 }
 0x48d   : > { %2650 = vmatmul.mubr.bf16.gmra.mrb[28].mxu0 %v2804_v20 }
 0x548   : > { %v2639_v27 = vpop.f32.mrb[16].mxu0 }
 0x549   : > { %v3650_v31 = vadd.f32 %v2639_v27, %v1854_v24  ;;  %v2003_v36 = vpop.f32.mrb[17].mxu0  ;;  %v1904_v24 = vpop.permute.xlu0 %1903 }
 0x54a   : > { %v3652_v39 = vadd.f32 %v2003_v36, %v1844_v56  ;;  %v2640_v26 = vpop.f32.mrb[18].mxu0 }
 0x54b   : > { %v2068_v40 = vmul.f32 %v3650_v31, %v3650_v31  ;;  %v3656_v37 = vadd.f32 %v2640_v26, %v1859_v17  ;;  %v2006_v35 = vpop.f32.mrb[19].mxu0  ;;  %v2084_v17 = vmul.f32 0.5, %v3650_v31 }
 0x54c   : > { %v2066_v45 = vmul.f32 %v3652_v39, %v3652_v39  ;;  %v3660_v21 = vadd.f32 %v2006_v35, %v1849_v28  ;;  %v1909_v35 = vpop.permute.xlu1 %1908 }
 0x54d   : > { %v2100_v12 = vmul.f32 0.035677407, %v2068_v40  ;;  %v2069_v33 = vmul.f32 %v3656_v37, %v3656_v37 }
 0x54e   : > { %v2098_v47 = vmul.f32 0.035677407, %v2066_v45  ;;  %v2067_v46 = vmul.f32 %v3660_v21, %v3660_v21  ;;  %v2085_v45 = vmul.f32 0.5, %v3656_v37 }
 0x54f   : > { %v2116_v41 = vadd.f32 0.7978846, %v2100_v12  ;;  %v2101_v49 = vmul.f32 0.035677407, %v2069_v33 }
 0x550   : > { %v2114_v34 = vadd.f32 0.7978846, %v2098_v47  ;;  %v2099_v52 = vmul.f32 0.035677407, %v2067_v46  ;;  %v2643_v53 = vpop.f32.mrb[20].mxu0 }
 0x551   : > { %v2132_v54 = vmul.f32 %v2116_v41, %v3650_v31  ;;  %v2117_v51 = vadd.f32 0.7978846, %v2101_v49  ;;  %v2028_v57 = vadd.f32 %v2643_v53, %v1874_v38  ;;  %v2019_v58 = vpop.f32.mrb[21].mxu0 }
 0x552   : > { %v2130_v61 = vmul.f32 %v2114_v34, %v3652_v39  ;;  %v2115_v3 = vadd.f32 0.7978846, %v2099_v52  ;;  %v2020_v62 = vadd.f32 %v2019_v58, %v1864_v32  ;;  %v2644_v23 = vpop.f32.mrb[22].mxu0 }
 0x553   : > { %2869 = vtanh.f32 %v2132_v54  ;;  %v2133_v22 = vmul.f32 %v2117_v51, %v3656_v37  ;;  %v2072_v0 = vmul.f32 %v2028_v57, %v2028_v57  ;;  %v2022_v2 = vpop.f32.mrb[23].mxu0  ;;  %v2031_v5 = vadd.f32 %v2644_v23, %v1879_v43 }
 0x554   : > { %2871 = vtanh.f32 %v2130_v61  ;;  %v2131_v11 = vmul.f32 %v2115_v3, %v3660_v21  ;;  %v2070_v4 = vmul.f32 %v2020_v62, %v2020_v62  ;;  %v2023_v13 = vadd.f32 %v2022_v2, %v1869_v8 }
 0x555   : > { %2873 = vtanh.f32 %v2133_v22  ;;  %v2104_v30 = vmul.f32 0.035677407, %v2072_v0  ;;  %v2073_v63 = vmul.f32 %v2031_v5, %v2031_v5  ;;  %v2082_v43 = vmul.f32 0.5, %v3652_v39 }
 0x556   : > { %2875 = vtanh.f32 %v2131_v11  ;;  %v2102_v6 = vmul.f32 0.035677407, %v2070_v4  ;;  %v2071_v9 = vmul.f32 %v2023_v13, %v2023_v13  ;;  %v2088_v34 = vmul.f32 0.5, %v2028_v57  ;;  %v1919_v4 = vpop.permute.xlu1 %1918 }
 0x557   : > { %v2120_v7 = vadd.f32 0.7978846, %v2104_v30  ;;  %v2105_v14 = vmul.f32 0.035677407, %v2073_v63  ;;  %v2086_v39 = vmul.f32 0.5, %v2020_v62  ;;  %v2089_v54 = vmul.f32 0.5, %v2031_v5 }
 0x558   : > { %v2118_v44 = vadd.f32 0.7978846, %v2102_v6  ;;  %v2647_v59 = vpop.f32.mrb[24].mxu0  ;;  %v2103_v15 = vmul.f32 0.035677407, %v2071_v9  ;;  %v2087_v37 = vmul.f32 0.5, %v2023_v13 }
 0x559   : > { %v2136_v60 = vmul.f32 %v2120_v7, %v2028_v57  ;;  %v3670_v16 = vadd.f32 %v2647_v59, %v1894_v29  ;;  %v2035_v50 = vpop.f32.mrb[25].mxu0  ;;  %v2121_v19 = vadd.f32 0.7978846, %v2105_v14 }
 0x55a   : > { %v2134_v1 = vmul.f32 %v2118_v44, %v2020_v62  ;;  %v3672_v55 = vadd.f32 %v2035_v50, %v1884_v48  ;;  %v2648_v18 = vpop.f32.mrb[26].mxu0  ;;  %v2119_v20 = vadd.f32 0.7978846, %v2103_v15  ;;  %v2083_v48 = vmul.f32 0.5, %v3660_v21 }
 0x55b   : > { %2877 = vtanh.f32 %v2136_v60  ;;  %v2076_v56 = vmul.f32 %v3670_v16, %v3670_v16  ;;  %v2038_v28 = vpop.f32.mrb[27].mxu0  ;;  %v2137_v27 = vmul.f32 %v2121_v19, %v2031_v5  ;;  %v3679_v26 = vadd.f32 %v2648_v18, %v1899_v10 }
 0x55c   : > { %2879 = vtanh.f32 %v2134_v1  ;;  %v2074_v32 = vmul.f32 %v3672_v55, %v3672_v55  ;;  %v2135_v36 = vmul.f32 %v2119_v20, %v2023_v13  ;;  %v3683_v33 = vadd.f32 %v2038_v28, %v1889_v42  ;;  %v1914_v42 = vpop.permute.xlu0 %1913 }
 0x55d   : > { %v2870_v8 = vpop.eup %2869  ;;  %v2108_v38 = vmul.f32 0.035677407, %v2076_v56  ;;  %2881 = vtanh.f32 %v2137_v27  ;;  %v2077_v41 = vmul.f32 %v3679_v26, %v3679_v26 }
 0x55e   : > { %v2872_v40 = vpop.eup %2871  ;;  %v2106_v12 = vmul.f32 0.035677407, %v2074_v32  ;;  %v2164_v47 = vadd.f32 1.0, %v2870_v8  ;;  %2883 = vtanh.f32 %v2135_v36  ;;  %v2075_v22 = vmul.f32 %v3683_v33, %v3683_v33 }
 0x55f   : > { %v2874_v31 = vpop.eup %2873  ;;  %v2124_v46 = vadd.f32 0.7978846, %v2108_v38  ;;  %v2162_v61 = vadd.f32 1.0, %v2872_v40  ;;  %v2109_v23 = vmul.f32 0.035677407, %v2077_v41 }
 0x560   : > { %v2876_v49 = vpop.eup %2875  ;;  %v2122_v52 = vadd.f32 0.7978846, %v2106_v12  ;;  %v2651_v53 = vpop.f32.mrb[28].mxu0  ;;  %v3692_v21 = vmul.f32 %v2164_v47, %v2084_v17  ;;  %v2165_v57 = vadd.f32 1.0, %v2874_v31  ;;  %v2107_v5 = vmul.f32 0.035677407, %v2075_v22 }
 0x561   : > { %v2140_v51 = vmul.f32 %v2124_v46, %v3670_v16  ;;  %v2051_v58 = vpop.f32.mrb[29].mxu0  ;;  %v2163_v2 = vadd.f32 1.0, %v2876_v49  ;;  %v3694_v11 = vadd.f32 %v2651_v53, %v1914_v42  ;;  %v2125_v30 = vadd.f32 0.7978846, %v2109_v23 }
 0x562   : > { %v2138_v3 = vmul.f32 %v2122_v52, %v3672_v55  ;;  %v2652_v0 = vpop.f32.mrb[30].mxu0  ;;  %v3696_v13 = vadd.f32 %v2051_v58, %v1904_v24  ;;  %v2123_v59 = vadd.f32 0.7978846, %v2107_v5  ;;  %v2178_v14 = vmul.f32 %v2162_v61, %v2082_v43 }
 0x563   : > { %v2054_v62 = vpop.f32.mrb[31].mxu0  ;;  %2885 = vtanh.f32 %v2140_v51  ;;  %v2080_v6 = vmul.f32 %v3694_v11, %v3694_v11  ;;  %v3700_v7 = vadd.f32 %v2652_v0, %v1919_v4  ;;  %v2141_v44 = vmul.f32 %v2125_v30, %v3679_v26 }
 0x564   : > { %2887 = vtanh.f32 %v2138_v3  ;;  %v3702_v63 = vadd.f32 %v2054_v62, %v1909_v35  ;;  %v2078_v60 = vmul.f32 %v3696_v13, %v3696_v13  ;;  %v2179_v18 = vmul.f32 %v2163_v2, %v2083_v48 }
 0x565   : > { %v2878_v29 = vpop.eup %2877  ;;  %v2112_v50 = vmul.f32 0.035677407, %v2080_v6  ;;  %v2081_v1 = vmul.f32 %v3700_v7, %v3700_v7  ;;  %2889 = vtanh.f32 %v2141_v44  ;;  %v2139_v19 = vmul.f32 %v2123_v59, %v3683_v33 }
 0x566   : > { %v2880_v9 = vpop.eup %2879  ;;  %v2168_v10 = vadd.f32 1.0, %v2878_v29  ;;  %v2110_v20 = vmul.f32 0.035677407, %v2078_v60  ;;  %v2181_v28 = vmul.f32 %v2165_v57, %v2085_v45  ;;  %v2079_v38 = vmul.f32 %v3702_v63, %v3702_v63 }
 0x567   : > { %v2166_v15 = vadd.f32 1.0, %v2880_v9  ;;  %v2882_v56 = vpop.eup %2881  ;;  %v2128_v17 = vadd.f32 0.7978846, %v2112_v50  ;;  %v2113_v32 = vmul.f32 0.035677407, %v2081_v1  ;;  %2891 = vtanh.f32 %v2139_v19 }
 0x568   : > { %v2184_v24 = vmul.f32 %v2168_v10, %v2088_v34  ;;  %v2884_v8 = vpop.eup %2883  ;;  %v2169_v27 = vadd.f32 1.0, %v2882_v56  ;;  %v2126_v36 = vadd.f32 0.7978846, %v2110_v20  ;;  %v2111_v46 = vmul.f32 0.035677407, %v2079_v38 }
 0x569   : > { %v2182_v40 = vmul.f32 %v2166_v15, %v2086_v39  ;;  %v2167_v35 = vadd.f32 1.0, %v2884_v8  ;;  %v2144_v43 = vmul.f32 %v2128_v17, %v3694_v11  ;;  %v2129_v12 = vadd.f32 0.7978846, %v2113_v32 }
 0x56a   : > { %v2185_v31 = vmul.f32 %v2169_v27, %v2089_v54  ;;  %v2142_v47 = vmul.f32 %v2126_v36, %v3696_v13  ;;  %v2194_v45 = vpack.c.bf16 %v2179_v18, %v2178_v14  ;;  %v2195_v48 = vpack.c.bf16 %v2181_v28, %v3692_v21 }
 0x56b   : > { %v2183_v41 = vmul.f32 %v2167_v35, %v2087_v37  ;;  %2893 = vtanh.f32 %v2144_v43  ;;  %v2145_v49 = vmul.f32 %v2129_v12, %v3700_v7  ;;  %v2127_v52 = vadd.f32 0.7978846, %v2111_v46 }
 0x56c   : > { %2895 = vtanh.f32 %v2142_v47  ;;  %2654 = vmatpush3.bf16.msra.mxu1 %v2194_v45  ;;  %v2197_v53 = vpack.c.bf16 %v2185_v31, %v2184_v24  ;;  %v2092_v37 = vmul.f32 0.5, %v3670_v16  ;;  %v2093_v3 = vmul.f32 0.5, %v3679_v26 }
 0x56d   : > { %v2886_v34 = vpop.eup %2885  ;;  %2897 = vtanh.f32 %v2145_v49  ;;  %2655 = vmatprep.subr.bf16.mxu1 %v2978_v25  ;;  %v2196_v54 = vpack.c.bf16 %v2183_v41, %v2182_v40  ;;  %v2143_v51 = vmul.f32 %v2127_v52, %v3702_v63  ;;  %v2090_v0 = vmul.f32 0.5, %v3672_v55 }
 0x56e   : > { %v2888_v39 = vpop.eup %2887  ;;  %v2172_v58 = vadd.f32 1.0, %v2886_v34  ;;  %v2091_v2 = vmul.f32 0.5, %v3683_v33  ;;  %v2096_v10 = vmul.f32 0.5, %v3694_v11  ;;  %v2097_v55 = vmul.f32 0.5, %v3700_v7 }
 0x56f   : > { %v2890_v42 = vpop.eup %2889  ;;  %2899 = vtanh.f32 %v2143_v51  ;;  %v2170_v61 = vadd.f32 1.0, %v2888_v39  ;;  %v2094_v15 = vmul.f32 0.5, %v3696_v13  ;;  %v2095_v50 = vmul.f32 0.5, %v3702_v63  ;;  %v2202_v13 = vld [vmem:[%s3805_s29] sm:$0x3]  ;;  %v2207_v63 = vpop.permute.xlu0 %2206 }
 0x570   : > { %2656 = vmatpush3.bf16.msra.mxu1 %v2195_v48  ;;  %v2173_v23 = vadd.f32 1.0, %v2890_v42  ;;  %v2188_v21 = vmul.f32 %v2172_v58, %v2092_v37 }
 0x571   : > { %2657 = vmatprep.subr.bf16.mxu1 %v2978_v25  ;;  %v2892_v22 = vpop.eup %2891  ;;  %v2186_v30 = vmul.f32 %v2170_v61, %v2090_v0 }
 0x572   : > { %v2189_v57 = vmul.f32 %v2173_v23, %v2093_v3  ;;  %v2171_v62 = vadd.f32 1.0, %v2892_v22 }
 0x574   : > { %2658 = vmatpush3.bf16.msra.mxu1 %v2196_v54  ;;  %v2187_v5 = vmul.f32 %v2171_v62, %v2091_v2  ;;  %v2199_v16 = vpack.c.bf16 %v2189_v57, %v2188_v21 }
 0x575   : > { %v2894_v4 = vpop.eup %2893  ;;  %2659 = vmatprep.subr.bf16.mxu1 %v2978_v25 }
 0x576   : > { %v2896_v29 = vpop.eup %2895  ;;  %v2176_v26 = vadd.f32 1.0, %v2894_v4  ;;  %v2198_v9 = vpack.c.bf16 %v2187_v5, %v2186_v30 }
 0x577   : > { %v2898_v6 = vpop.eup %2897  ;;  %v2174_v59 = vadd.f32 1.0, %v2896_v29 }
 0x578   : > { %v2177_v44 = vadd.f32 1.0, %v2898_v6  ;;  %2660 = vmatpush3.bf16.msra.mxu1 %v2197_v53  ;;  %v2192_v60 = vmul.f32 %v2176_v26, %v2096_v10 }
 0x579   : > { %2661 = vmatprep.subr.bf16.mxu1 %v2978_v25  ;;  %v2900_v33 = vpop.eup %2899  ;;  %v2190_v19 = vmul.f32 %v2174_v59, %v2094_v15 }
 0x57a   : > { %v2193_v14 = vmul.f32 %v2177_v44, %v2097_v55  ;;  %v2175_v1 = vadd.f32 1.0, %v2900_v33 }
 0x57c   : > { %2662 = vmatpush3.bf16.msra.mxu1 %v2198_v9  ;;  %v2201_v18 = vpack.c.bf16 %v2193_v14, %v2192_v60  ;;  %v2191_v11 = vmul.f32 %v2175_v1, %v2095_v50 }
 0x57d   : > { %2663 = vmatprep.subr.bf16.mxu1 %v2978_v25 }
 0x57e   : > { %v2200_v7 = vpack.c.bf16 %v2191_v11, %v2190_v19 }
 0x580   : > { %2664 = vmatpush3.bf16.msra.mxu1 %v2199_v16 }
 0x581   : > { %2665 = vmatprep.subr.bf16.mxu1 %v2978_v25 }
 0x584   : > { %2666 = vmatpush3.bf16.msra.mxu1 %v2200_v7 }
 0x585   : > { %2667 = vmatprep.subr.bf16.mxu1 %v2978_v25 }
 0x588   : > { %2668 = vmatpush3.bf16.msra.mxu1 %v2201_v18 }
 0x58b   : > { %2670 = vmatmul.mubr.bf16.vlgmr.msra.gmra.mrb[16].mxu1 %v2202_v13 }
 0x65e   : > { %v2243_v20 = vpop.f32.mrb[16].mxu1 }
 0x65f   : > { %v2244_v56 = vadd.f32 %v2243_v20, %v2207_v63  ;;  %v2671_v28 = vpop.f32.mrb[17].mxu1 }
 0x660   : > { %v2246_v24 = vpop.f32.mrb[18].mxu1 }
 0x661   : > { %2249 = vst [vmem:[%s3159_s28] sm:$0x7] %v2244_v56  ;;  %v2672_v17 = vpop.f32.mrb[19].mxu1 }
 0x662 PF: > { %s24_s21 = sadd.s32 1, %s2971_s21   ;;  %s3806_s10 = sld [smem:[#allocation5_spill]] }
 0x663   : > { %p21_p2 = scmp.ge.s32.totalorder %s24_s21, 6   ;;  %s3807_s12 = sld [smem:[#allocation6_spill]] }
 0x664   : > { %s3808_s29 = smov %s2943_s30  ;;  %s3809_s30 = smov %s3130_s13 }
 0x665   : > { %s3810_s15 = smov %s2951_s16  ;;  %s3811_s16 = smov %s3127_s8 }
 0x666   : > { %s3812_s17 = smov %s2963_s19  ;;  %s3813_s18 = smov %s2967_s20 }
 0x667   :  { %23 = sbr.rel (!%p21_p2) target bundleno = 14 (0xe), region = 202 }
 0x668   : > { %s3814_s19 = smov %s3806_s10 }
 0x669   : > { %s3815_s20 = smov %s3807_s12 }

</bundles_post_ra>
